<compile_context>
chip_gen: v6e
topology: v6e:2x2x1
jax: 0.10.0
libtpu: 0.0.40
codegen_flags: <defaults>
</compile_context>

<pallas_src>
import numpy as np
import jax
import jax.numpy as jnp
from jax import lax
from jax.experimental import pallas as pl
from jax.experimental.pallas import tpu as pltpu


# ----------------------------------------------------------------------------
# Fused forward kernel (whole module forward in one launch)
# ----------------------------------------------------------------------------
def make_fused_forward_kernel(n_layers, T, B, H, V, max_len):
    BP = 8                               # padded batch: 2B active rows + pad
    SQRT1_2 = 0.7071067811865476

    def kernel(*refs):
        x1_ref, x2_ref, p1_ref, p2_ref, q_ref = refs[:5]
        base = 5
        lstm_refs = refs[base:base + 3 * n_layers]
        (w1a_ref, w1b_ref, b1_ref, w2_ref, b2_ref,
         w3_ref, b3_ref) = refs[base + 3 * n_layers:base + 3 * n_layers + 7]
        logits_ref = refs[base + 3 * n_layers + 7]
        idx_ref = refs[base + 3 * n_layers + 8]
        gp_sc = refs[base + 3 * n_layers + 9]     # VMEM (T, 8, 4H)
        seq_sc = refs[base + 3 * n_layers + 10]   # VMEM (T, 8, H)

        D_in = x1_ref.shape[-1]

        # ---- layer-0 input: batch-major (B,T,D) -> time-major padded (T*8,D).
        # Two 0/1 selection matmuls replace any in-kernel transpose or
        # wrapper-side concat/transpose HLOs; pad sublanes come out as zeros.
        x1 = x1_ref[...].reshape(B * T, D_in)
        x2 = x2_ref[...].reshape(B * T, D_in)
        seq = (jnp.dot(p1_ref[...], x1, preferred_element_type=jnp.float32)
               + jnp.dot(p2_ref[...], x2, preferred_element_type=jnp.float32))

        # Static lane mask selecting the g-gate quarter (lanes [2H, 3H)).
        # Hoisted once (broadcast_in_dim is not CSE'd by JAX).
        lane = lax.broadcasted_iota(jnp.int32, (BP, 4 * H), 1)
        g_mask = jnp.logical_and(lane >= 2 * H, lane < 3 * H)

        sums = None
        for l in range(n_layers):
            wih = lstm_refs[3 * l][...]           # (D_in|H, 4H)  gates i,f,g,o
            whh = lstm_refs[3 * l + 1][...]       # (H, 4H)
            b = lstm_refs[3 * l + 2][...]         # (1, 4H)  b_ih + b_hh

            # Hoisted input projection: one GEMM for all timesteps, written to
            # the (T, 8, 4H) scratch so each timestep is an aligned tile load.
            gp = jnp.dot(seq, wih, preferred_element_type=jnp.float32) + b
            gp_sc[...] = gp.reshape(T, BP, 4 * H)

            h = jnp.zeros((BP, H), jnp.float32)
            c = jnp.zeros((BP, H), jnp.float32)
            acc = jnp.zeros((BP, H), jnp.float32)
            last = (l == n_layers - 1)

            # TODO(synk): pltpu.matmul_push_rhs(whh) once per layer +
            #             matmul_acc_lhs per step to avoid re-staging the RHS.
            for t in range(T):                    # static unroll (T fixed)
                # only this GEMM sits on the serial critical path
                g = gp_sc[t] + jnp.dot(h, whh,
                                       preferred_element_type=jnp.float32)
                sig = jax.nn.sigmoid(g)           # one full-vreg EUP pass
                th = jnp.tanh(g)                  # one full-vreg EUP pass
                act = jnp.where(g_mask, th, sig)  # [sig_i|sig_f|tanh_g|sig_o]
                # half-vreg rotation aligns the g-gate with the i-gate so the
                # i*g product is a single full-width VPU mul (XLU slot is free)
                ig = (act * pltpu.roll(act, 2 * H, axis=1))[:, 0:H]
                f_g = act[:, H:2 * H]
                o_g = act[:, 3 * H:4 * H]
                c = f_g * c + ig
                h = o_g * jnp.tanh(c)
                if last:
                    acc = acc + h                 # fused seq.sum(dim=time)
                else:
                    seq_sc[t] = h                 # aligned (8, H) tile store
            if last:
                sums = acc                        # (8, H); rows >= 2B are pad
            else:
                seq = seq_sc[...].reshape(T * BP, H)

        # ------------------------- MLP head (all at 8 sublanes) -------------
        # fc1 over cat([out1, out2]) without concat/slicing: stream-2 rows are
        # aligned onto stream-1 rows with a tiny 0/1 selection matmul.
        s2 = jnp.dot(q_ref[...], sums, preferred_element_type=jnp.float32)
        h1 = (jnp.dot(sums, w1a_ref[...], preferred_element_type=jnp.float32)
              + jnp.dot(s2, w1b_ref[...], preferred_element_type=jnp.float32)
              + b1_ref[...])
        x = 0.5 * h1 * (1.0 + lax.erf(h1 * SQRT1_2))          # exact GELU
        h2 = jnp.dot(x, w2_ref[...],
                     preferred_element_type=jnp.float32) + b2_ref[...]
        x = x + jnp.maximum(h2, 0.0)
        # eval-mode BatchNorm is folded into (w3, b3) on the host.
        logits = (jnp.dot(x, w3_ref[...], preferred_element_type=jnp.float32)
                  + b3_ref[...])
        logits_ref[...] = logits                  # lane/sublane-dense store

        # ---- fused argmax over the vocab axis (lane layout v*max_len + m) ---
        best_val = logits[:, 0:max_len]
        best_idx = jnp.zeros((BP, max_len), jnp.int32)
        for v in range(1, V):
            cand = logits[:, v * max_len:(v + 1) * max_len]
            upd = cand > best_val                 # strict '>' -> first max wins
            best_val = jnp.where(upd, cand, best_val)
            best_idx = jnp.where(upd, v, best_idx)
        idx_ref[...] = best_idx

    return kernel


# ----------------------------------------------------------------------------
# Wrapper
# ----------------------------------------------------------------------------
def build_forward(n_layers, T, B, D, H, vocab_size, max_len):
    BP = 8
    out_dim = vocab_size * max_len
    out_pad = ((out_dim + 127) // 128) * 128      # lane-dense logits store
    kernel = make_fused_forward_kernel(n_layers, T, B, H, vocab_size, max_len)

    # Static 0/1 selection matrices (built once on the host, passed like
    # weights): batch-major -> time-major-padded layout, and stream-2 row
    # alignment for the head. Pad rows are all-zero by construction.
    P1 = np.zeros((T * BP, B * T), np.float32)
    P2 = np.zeros((T * BP, B * T), np.float32)
    for t in range(T):
        for b in range(B):
            P1[t * BP + b, b * T + t] = 1.0
            P2[t * BP + B + b, b * T + t] = 1.0
    Q = np.zeros((BP, BP), np.float32)
    Q[np.arange(B), np.arange(B) + B] = 1.0
    p1_c, p2_c, q_c = jnp.asarray(P1), jnp.asarray(P2), jnp.asarray(Q)

    vmem = pl.BlockSpec(memory_space=pltpu.MemorySpace.VMEM)  # whole-array

    def forward(x1, x2, flat_params):
        args = (x1, x2, p1_c, p2_c, q_c) + tuple(flat_params)
        logits_pad, idx_pad = pl.pallas_call(
            kernel,
            out_shape=(jax.ShapeDtypeStruct((BP, out_pad), jnp.float32),
                       jax.ShapeDtypeStruct((BP, max_len), jnp.int32)),
            in_specs=[vmem] * len(args),
            out_specs=(vmem, vmem),
            scratch_shapes=[pltpu.VMEM((T, BP, 4 * H), jnp.float32),
                            pltpu.VMEM((T, BP, H), jnp.float32)],
        )(*args)
        logits = logits_pad[:B, :out_dim].reshape(B, vocab_size, max_len)
        idx = idx_pad[:B]                         # (B, max_len) int32
        return idx, logits

    return jax.jit(forward)


# ----------------------------------------------------------------------------
# Deterministic parameter construction (BN fold + fc3 padding)
# ----------------------------------------------------------------------------
def init_params(key, input_size, proj_dim, n_layers, vocab_size, max_len):
    # NOTE: real PyTorch weights (weight_ih_l{k} of shape (4H, in), separate
    # b_ih/b_hh) must be transposed / bias-summed into this packed layout.
    H = proj_dim
    out_dim = vocab_size * max_len
    out_pad = ((out_dim + 127) // 128) * 128
    keys = iter(jax.random.split(key, 4 * n_layers + 16))

    def rnd(shape, scale=0.1):
        return scale * jax.random.normal(next(keys), shape, dtype=jnp.float32)

    flat = []
    for l in range(n_layers):
        d_in = input_size if l == 0 else H
        flat += [rnd((d_in, 4 * H)),      # W_ih (gates i,f,g,o stacked on out)
                 rnd((H, 4 * H)),         # W_hh
                 rnd((1, 4 * H))]         # b_ih + b_hh combined

    w1a, w1b, b1 = rnd((H, H)), rnd((H, H)), rnd((1, H))
    w2, b2 = rnd((H, H)), rnd((1, H))
    w3, b3 = rnd((H, out_dim)), rnd((1, out_dim))

    # BatchNorm1d default init / running stats (eval mode)
    gamma = jnp.ones((1, H), jnp.float32)
    beta = jnp.zeros((1, H), jnp.float32)
    mean = jnp.zeros((1, H), jnp.float32)
    var = jnp.ones((1, H), jnp.float32)

    # Fold eval-mode BN (y = x*s + t) into fc3: x@(s*W3) + (t@W3 + b3)
    s = gamma / jnp.sqrt(var + 1e-5)
    t = beta - mean * s
    w3f = w3 * s.reshape(H, 1)
    b3f = b3 + t @ w3
    if out_pad != out_dim:                # pad to lane-dense store width
        w3f = jnp.pad(w3f, ((0, 0), (0, out_pad - out_dim)))
        b3f = jnp.pad(b3f, ((0, 0), (0, out_pad - out_dim)))

    flat += [w1a, w1b, b1, w2, b2, w3f, b3f]
    return tuple(flat)


# ----------------------------------------------------------------------------
# Pure-JAX reference (eval-mode PyTorch semantics) for a correctness check
# ----------------------------------------------------------------------------
def reference_forward(x1, x2, flat_params, *, n_layers, H, vocab_size, max_len):
    hdot = lambda a, b: jnp.dot(a, b, precision=lax.Precision.HIGHEST)
    out_dim = vocab_size * max_len
    lstm_p = flat_params[:3 * n_layers]
    w1a, w1b, b1, w2, b2, w3f, b3f = flat_params[3 * n_layers:]

    def run_lstm(x):
        seq = x
        for l in range(n_layers):
            wih, whh, b = lstm_p[3 * l], lstm_p[3 * l + 1], lstm_p[3 * l + 2]
            Bb, Tt, _ = seq.shape
            h = jnp.zeros((Bb, H), jnp.float32)
            c = jnp.zeros((Bb, H), jnp.float32)
            hs = []
            for t in range(Tt):
                g = hdot(seq[:, t, :], wih) + hdot(h, whh) + b
                i = jax.nn.sigmoid(g[:, 0:H])
                f = jax.nn.sigmoid(g[:, H:2 * H])
                gg = jnp.tanh(g[:, 2 * H:3 * H])
                o = jax.nn.sigmoid(g[:, 3 * H:4 * H])
                c = f * c + i * gg
                h = o * jnp.tanh(c)
                hs.append(h)
            seq = jnp.stack(hs, axis=1)
        return seq

    out1 = run_lstm(x1).sum(axis=1)
    out2 = run_lstm(x2).sum(axis=1)
    h1 = hdot(out1, w1a) + hdot(out2, w1b) + b1
    xh = 0.5 * h1 * (1.0 + lax.erf(h1 * 0.7071067811865476))
    xh = xh + jnp.maximum(hdot(xh, w2) + b2, 0.0)
    logits = (hdot(xh, w3f) + b3f)[:, :out_dim].reshape(-1, vocab_size, max_len)
    return jnp.argmax(logits, axis=1), logits


# ----------------------------------------------------------------------------
if __name__ == "__main__":
    # Synthetic vocab (stand-in for the knowledge-base derived vocabulary)
    atomic_concept_names = ["A", "B", "C", "D"]
    role_names = ["r", "s"]
    vocab = atomic_concept_names + role_names + ["⊔", "⊓", "∃", "∀", "¬", "⊤",
                                                 "⊥", ".", " ", "(", ")"]
    vocab = sorted(vocab) + ["PAD"]
    inv_vocab = np.array(vocab, dtype="object")
    V = len(vocab)                        # 18

    # Small shapes consistent with the module's kwargs
    B, T = 2, 8                           # batch, sequence length
    input_size, proj_dim, n_layers = 32, 32, 2
    max_len = 8

    key = jax.random.PRNGKey(0)
    kx1, kx2, kp = jax.random.split(key, 3)
    x1 = jax.random.normal(kx1, (B, T, input_size), dtype=jnp.float32)
    x2 = jax.random.normal(kx2, (B, T, input_size), dtype=jnp.float32)

    flat_params = init_params(kp, input_size, proj_dim, n_layers, V, max_len)
    forward = build_forward(n_layers, T, B, input_size, proj_dim, V, max_len)

    idx, logits = forward(x1, x2, flat_params)
    jax.block_until_ready((idx, logits))

    # Correctness checks against a pure-JAX reference of the eval-mode module.
    ref_idx, ref_logits = reference_forward(
        x1, x2, flat_params, n_layers=n_layers, H=proj_dim,
        vocab_size=V, max_len=max_len)
    np.testing.assert_allclose(np.asarray(logits), np.asarray(ref_logits),
                               rtol=5e-3, atol=5e-3)
    assert (np.asarray(idx)
            == np.asarray(jnp.argmax(logits, axis=1))).all()

    # Token -> string decode stays off the device hot path (host-side, lazy).
    aligned_chars = inv_vocab[np.asarray(idx)]

    assert logits.shape == (B, V, max_len)
    assert idx.shape == (B, max_len)
    assert aligned_chars.shape == (B, max_len)
    print("KERNEL_OK")
</pallas_src>

<mosaic_0001>
module attributes {stable_mosaic.version = 11 : i64} {
  func.func @kernel(%arg0: memref<2x8x32xf32, #tpu.memory_space<vmem>>, %arg1: memref<2x8x32xf32, #tpu.memory_space<vmem>>, %arg2: memref<64x16xf32, #tpu.memory_space<vmem>>, %arg3: memref<64x16xf32, #tpu.memory_space<vmem>>, %arg4: memref<8x8xf32, #tpu.memory_space<vmem>>, %arg5: memref<32x128xf32, #tpu.memory_space<vmem>>, %arg6: memref<32x128xf32, #tpu.memory_space<vmem>>, %arg7: memref<1x128xf32, #tpu.memory_space<vmem>>, %arg8: memref<32x128xf32, #tpu.memory_space<vmem>>, %arg9: memref<32x128xf32, #tpu.memory_space<vmem>>, %arg10: memref<1x128xf32, #tpu.memory_space<vmem>>, %arg11: memref<32x32xf32, #tpu.memory_space<vmem>>, %arg12: memref<32x32xf32, #tpu.memory_space<vmem>>, %arg13: memref<1x32xf32, #tpu.memory_space<vmem>>, %arg14: memref<32x32xf32, #tpu.memory_space<vmem>>, %arg15: memref<1x32xf32, #tpu.memory_space<vmem>>, %arg16: memref<32x256xf32, #tpu.memory_space<vmem>>, %arg17: memref<1x256xf32, #tpu.memory_space<vmem>>, %arg18: memref<8x256xf32, #tpu.memory_space<vmem>>, %arg19: memref<8x8xi32, #tpu.memory_space<vmem>>, %arg20: memref<8x8x128xf32, #tpu.memory_space<vmem>>, %arg21: memref<8x8x32xf32, #tpu.memory_space<vmem>>) attributes {dimension_semantics = [], scalar_prefetch = 0 : i64, scratch_operands = 2 : i64, tpu.core_type = #tpu.core_type<tc>} {
    %c0 = arith.constant 0 : index
    %c0_0 = arith.constant 0 : index
    %c0_1 = arith.constant 0 : index
    %0 = vector.load %arg0[%c0, %c0_0, %c0_1] : memref<2x8x32xf32, #tpu.memory_space<vmem>>, vector<2x8x32xf32>
    %1 = vector.shape_cast %0 : vector<2x8x32xf32> to vector<16x32xf32>
    %c0_2 = arith.constant 0 : index
    %c0_3 = arith.constant 0 : index
    %c0_4 = arith.constant 0 : index
    %2 = vector.load %arg1[%c0_2, %c0_3, %c0_4] : memref<2x8x32xf32, #tpu.memory_space<vmem>>, vector<2x8x32xf32>
    %3 = vector.shape_cast %2 : vector<2x8x32xf32> to vector<16x32xf32>
    %c0_5 = arith.constant 0 : index
    %c0_6 = arith.constant 0 : index
    %4 = vector.load %arg2[%c0_5, %c0_6] : memref<64x16xf32, #tpu.memory_space<vmem>>, vector<64x16xf32>
    %cst = arith.constant dense<0.000000e+00> : vector<64x32xf32>
    %5 = tpu.matmul %4, %1, %cst {dimension_numbers = #tpu.dot_dimension_numbers<[1], [0], [0], [1], [0, 0, 1, 1], [], []>} : vector<64x16xf32>, vector<16x32xf32>, vector<64x32xf32> -> vector<64x32xf32>
    %c0_7 = arith.constant 0 : index
    %c0_8 = arith.constant 0 : index
    %6 = vector.load %arg3[%c0_7, %c0_8] : memref<64x16xf32, #tpu.memory_space<vmem>>, vector<64x16xf32>
    %cst_9 = arith.constant dense<0.000000e+00> : vector<64x32xf32>
    %7 = tpu.matmul %6, %3, %cst_9 {dimension_numbers = #tpu.dot_dimension_numbers<[1], [0], [0], [1], [0, 0, 1, 1], [], []>} : vector<64x16xf32>, vector<16x32xf32>, vector<64x32xf32> -> vector<64x32xf32>
    %8 = arith.addf %5, %7 : vector<64x32xf32>
    %9 = tpu.iota {dimensions = array<i32: 1>} : vector<8x128xi32>
    %c64_i32 = arith.constant 64 : i32
    %10 = vector.broadcast %c64_i32 : i32 to vector<8x128xi32>
    %11 = arith.cmpi sge, %9, %10 : vector<8x128xi32>
    %c96_i32 = arith.constant 96 : i32
    %12 = vector.broadcast %c96_i32 : i32 to vector<8x128xi32>
    %13 = arith.cmpi slt, %9, %12 : vector<8x128xi32>
    %14 = arith.andi %11, %13 : vector<8x128xi1>
    %c0_10 = arith.constant 0 : index
    %c0_11 = arith.constant 0 : index
    %15 = vector.load %arg5[%c0_10, %c0_11] : memref<32x128xf32, #tpu.memory_space<vmem>>, vector<32x128xf32>
    %c0_12 = arith.constant 0 : index
    %c0_13 = arith.constant 0 : index
    %16 = vector.load %arg6[%c0_12, %c0_13] : memref<32x128xf32, #tpu.memory_space<vmem>>, vector<32x128xf32>
    %c0_14 = arith.constant 0 : index
    %c0_15 = arith.constant 0 : index
    %17 = vector.load %arg7[%c0_14, %c0_15] : memref<1x128xf32, #tpu.memory_space<vmem>>, vector<1x128xf32>
    %cst_16 = arith.constant dense<0.000000e+00> : vector<64x128xf32>
    %18 = tpu.matmul %8, %15, %cst_16 {dimension_numbers = #tpu.dot_dimension_numbers<[1], [0], [0], [1], [0, 0, 1, 1], [], []>} : vector<64x32xf32>, vector<32x128xf32>, vector<64x128xf32> -> vector<64x128xf32>
    %19 = vector.broadcast %17 : vector<1x128xf32> to vector<64x128xf32>
    %20 = arith.addf %18, %19 : vector<64x128xf32>
    %21 = vector.shape_cast %20 : vector<64x128xf32> to vector<8x8x128xf32>
    %c0_17 = arith.constant 0 : index
    %c0_18 = arith.constant 0 : index
    %c0_19 = arith.constant 0 : index
    %22 = vector.load %arg20[%c0_17, %c0_18, %c0_19] : memref<8x8x128xf32, #tpu.memory_space<vmem>>, vector<8x8x128xf32>
    tpu.vector_store %arg20[%c0_17, %c0_18, %c0_19], %21 {strides = array<i32>} : memref<8x8x128xf32, #tpu.memory_space<vmem>>, vector<8x8x128xf32>,
    %cst_20 = arith.constant 0.000000e+00 : f32
    %23 = vector.broadcast %cst_20 : f32 to vector<8x32xf32>
    %cst_21 = arith.constant 0.000000e+00 : f32
    %24 = vector.broadcast %cst_21 : f32 to vector<8x32xf32>
    %c0_22 = arith.constant 0 : index
    %c0_23 = arith.constant 0 : index
    %c0_24 = arith.constant 0 : index
    %25 = vector.load %arg20[%c0_22, %c0_23, %c0_24] : memref<8x8x128xf32, #tpu.memory_space<vmem>>, vector<1x8x128xf32>
    %26 = vector.shape_cast %25 : vector<1x8x128xf32> to vector<8x128xf32>
    %cst_25 = arith.constant dense<0.000000e+00> : vector<8x128xf32>
    %27 = tpu.matmul %23, %16, %cst_25 {dimension_numbers = #tpu.dot_dimension_numbers<[1], [0], [0], [1], [0, 0, 1, 1], [], []>} : vector<8x32xf32>, vector<32x128xf32>, vector<8x128xf32> -> vector<8x128xf32>
    %28 = arith.addf %26, %27 : vector<8x128xf32>
    %29 = arith.negf %28 : vector<8x128xf32>
    %30 = math.exp %29 : vector<8x128xf32>
    %cst_26 = arith.constant 1.000000e+00 : f32
    %31 = vector.broadcast %cst_26 : f32 to vector<8x128xf32>
    %32 = arith.addf %31, %30 : vector<8x128xf32>
    %33 = arith.divf %31, %32 : vector<8x128xf32>
    %34 = math.tanh %28 : vector<8x128xf32>
    %35 = arith.select %14, %34, %33 : vector<8x128xi1>, vector<8x128xf32>
    %c64_i32_27 = arith.constant 64 : i32
    %36 = tpu.dynamic_rotate %35 by %c64_i32_27 dim 1 : vector<8x128xf32>, i32 -> vector<8x128xf32>
    %37 = arith.mulf %35, %36 : vector<8x128xf32>
    %38 = vector.extract_strided_slice %37 {offsets = [0, 0], sizes = [8, 32], strides = [1, 1]} : vector<8x128xf32> to vector<8x32xf32>
    %39 = vector.extract_strided_slice %35 {offsets = [0, 32], sizes = [8, 32], strides = [1, 1]} : vector<8x128xf32> to vector<8x32xf32>
    %40 = vector.extract_strided_slice %35 {offsets = [0, 96], sizes = [8, 32], strides = [1, 1]} : vector<8x128xf32> to vector<8x32xf32>
    %41 = arith.mulf %39, %24 : vector<8x32xf32>
    %42 = arith.addf %41, %38 : vector<8x32xf32>
    %43 = math.tanh %42 : vector<8x32xf32>
    %44 = arith.mulf %40, %43 : vector<8x32xf32>
    %c0_28 = arith.constant 0 : index
    %c0_29 = arith.constant 0 : index
    %c0_30 = arith.constant 0 : index
    %45 = vector.load %arg21[%c0_28, %c0_29, %c0_30] : memref<8x8x32xf32, #tpu.memory_space<vmem>>, vector<1x8x32xf32>
    %46 = vector.shape_cast %45 : vector<1x8x32xf32> to vector<8x32xf32>
    %47 = vector.shape_cast %44 : vector<8x32xf32> to vector<1x8x32xf32>
    tpu.vector_store %arg21[%c0_28, %c0_29, %c0_30], %47 {strides = array<i32>} : memref<8x8x32xf32, #tpu.memory_space<vmem>>, vector<1x8x32xf32>,
    %c1 = arith.constant 1 : index
    %c0_31 = arith.constant 0 : index
    %c0_32 = arith.constant 0 : index
    %48 = vector.load %arg20[%c1, %c0_31, %c0_32] : memref<8x8x128xf32, #tpu.memory_space<vmem>>, vector<1x8x128xf32>
    %49 = vector.shape_cast %48 : vector<1x8x128xf32> to vector<8x128xf32>
    %cst_33 = arith.constant dense<0.000000e+00> : vector<8x128xf32>
    %50 = tpu.matmul %44, %16, %cst_33 {dimension_numbers = #tpu.dot_dimension_numbers<[1], [0], [0], [1], [0, 0, 1, 1], [], []>} : vector<8x32xf32>, vector<32x128xf32>, vector<8x128xf32> -> vector<8x128xf32>
    %51 = arith.addf %49, %50 : vector<8x128xf32>
    %52 = arith.negf %51 : vector<8x128xf32>
    %53 = math.exp %52 : vector<8x128xf32>
    %cst_34 = arith.constant 1.000000e+00 : f32
    %54 = vector.broadcast %cst_34 : f32 to vector<8x128xf32>
    %55 = arith.addf %54, %53 : vector<8x128xf32>
    %56 = arith.divf %54, %55 : vector<8x128xf32>
    %57 = math.tanh %51 : vector<8x128xf32>
    %58 = arith.select %14, %57, %56 : vector<8x128xi1>, vector<8x128xf32>
    %c64_i32_35 = arith.constant 64 : i32
    %59 = tpu.dynamic_rotate %58 by %c64_i32_35 dim 1 : vector<8x128xf32>, i32 -> vector<8x128xf32>
    %60 = arith.mulf %58, %59 : vector<8x128xf32>
    %61 = vector.extract_strided_slice %60 {offsets = [0, 0], sizes = [8, 32], strides = [1, 1]} : vector<8x128xf32> to vector<8x32xf32>
    %62 = vector.extract_strided_slice %58 {offsets = [0, 32], sizes = [8, 32], strides = [1, 1]} : vector<8x128xf32> to vector<8x32xf32>
    %63 = vector.extract_strided_slice %58 {offsets = [0, 96], sizes = [8, 32], strides = [1, 1]} : vector<8x128xf32> to vector<8x32xf32>
    %64 = arith.mulf %62, %42 : vector<8x32xf32>
    %65 = arith.addf %64, %61 : vector<8x32xf32>
    %66 = math.tanh %65 : vector<8x32xf32>
    %67 = arith.mulf %63, %66 : vector<8x32xf32>
    %c1_36 = arith.constant 1 : index
    %c0_37 = arith.constant 0 : index
    %c0_38 = arith.constant 0 : index
    %68 = vector.load %arg21[%c1_36, %c0_37, %c0_38] : memref<8x8x32xf32, #tpu.memory_space<vmem>>, vector<1x8x32xf32>
    %69 = vector.shape_cast %68 : vector<1x8x32xf32> to vector<8x32xf32>
    %70 = vector.shape_cast %67 : vector<8x32xf32> to vector<1x8x32xf32>
    tpu.vector_store %arg21[%c1_36, %c0_37, %c0_38], %70 {strides = array<i32>} : memref<8x8x32xf32, #tpu.memory_space<vmem>>, vector<1x8x32xf32>,
    %c2 = arith.constant 2 : index
    %c0_39 = arith.constant 0 : index
    %c0_40 = arith.constant 0 : index
    %71 = vector.load %arg20[%c2, %c0_39, %c0_40] : memref<8x8x128xf32, #tpu.memory_space<vmem>>, vector<1x8x128xf32>
    %72 = vector.shape_cast %71 : vector<1x8x128xf32> to vector<8x128xf32>
    %cst_41 = arith.constant dense<0.000000e+00> : vector<8x128xf32>
    %73 = tpu.matmul %67, %16, %cst_41 {dimension_numbers = #tpu.dot_dimension_numbers<[1], [0], [0], [1], [0, 0, 1, 1], [], []>} : vector<8x32xf32>, vector<32x128xf32>, vector<8x128xf32> -> vector<8x128xf32>
    %74 = arith.addf %72, %73 : vector<8x128xf32>
    %75 = arith.negf %74 : vector<8x128xf32>
    %76 = math.exp %75 : vector<8x128xf32>
    %cst_42 = arith.constant 1.000000e+00 : f32
    %77 = vector.broadcast %cst_42 : f32 to vector<8x128xf32>
    %78 = arith.addf %77, %76 : vector<8x128xf32>
    %79 = arith.divf %77, %78 : vector<8x128xf32>
    %80 = math.tanh %74 : vector<8x128xf32>
    %81 = arith.select %14, %80, %79 : vector<8x128xi1>, vector<8x128xf32>
    %c64_i32_43 = arith.constant 64 : i32
    %82 = tpu.dynamic_rotate %81 by %c64_i32_43 dim 1 : vector<8x128xf32>, i32 -> vector<8x128xf32>
    %83 = arith.mulf %81, %82 : vector<8x128xf32>
    %84 = vector.extract_strided_slice %83 {offsets = [0, 0], sizes = [8, 32], strides = [1, 1]} : vector<8x128xf32> to vector<8x32xf32>
    %85 = vector.extract_strided_slice %81 {offsets = [0, 32], sizes = [8, 32], strides = [1, 1]} : vector<8x128xf32> to vector<8x32xf32>
    %86 = vector.extract_strided_slice %81 {offsets = [0, 96], sizes = [8, 32], strides = [1, 1]} : vector<8x128xf32> to vector<8x32xf32>
    %87 = arith.mulf %85, %65 : vector<8x32xf32>
    %88 = arith.addf %87, %84 : vector<8x32xf32>
    %89 = math.tanh %88 : vector<8x32xf32>
    %90 = arith.mulf %86, %89 : vector<8x32xf32>
    %c2_44 = arith.constant 2 : index
    %c0_45 = arith.constant 0 : index
    %c0_46 = arith.constant 0 : index
    %91 = vector.load %arg21[%c2_44, %c0_45, %c0_46] : memref<8x8x32xf32, #tpu.memory_space<vmem>>, vector<1x8x32xf32>
    %92 = vector.shape_cast %91 : vector<1x8x32xf32> to vector<8x32xf32>
    %93 = vector.shape_cast %90 : vector<8x32xf32> to vector<1x8x32xf32>
    tpu.vector_store %arg21[%c2_44, %c0_45, %c0_46], %93 {strides = array<i32>} : memref<8x8x32xf32, #tpu.memory_space<vmem>>, vector<1x8x32xf32>,
    %c3 = arith.constant 3 : index
    %c0_47 = arith.constant 0 : index
    %c0_48 = arith.constant 0 : index
    %94 = vector.load %arg20[%c3, %c0_47, %c0_48] : memref<8x8x128xf32, #tpu.memory_space<vmem>>, vector<1x8x128xf32>
    %95 = vector.shape_cast %94 : vector<1x8x128xf32> to vector<8x128xf32>
    %cst_49 = arith.constant dense<0.000000e+00> : vector<8x128xf32>
    %96 = tpu.matmul %90, %16, %cst_49 {dimension_numbers = #tpu.dot_dimension_numbers<[1], [0], [0], [1], [0, 0, 1, 1], [], []>} : vector<8x32xf32>, vector<32x128xf32>, vector<8x128xf32> -> vector<8x128xf32>
    %97 = arith.addf %95, %96 : vector<8x128xf32>
    %98 = arith.negf %97 : vector<8x128xf32>
    %99 = math.exp %98 : vector<8x128xf32>
    %cst_50 = arith.constant 1.000000e+00 : f32
    %100 = vector.broadcast %cst_50 : f32 to vector<8x128xf32>
    %101 = arith.addf %100, %99 : vector<8x128xf32>
    %102 = arith.divf %100, %101 : vector<8x128xf32>
    %103 = math.tanh %97 : vector<8x128xf32>
    %104 = arith.select %14, %103, %102 : vector<8x128xi1>, vector<8x128xf32>
    %c64_i32_51 = arith.constant 64 : i32
    %105 = tpu.dynamic_rotate %104 by %c64_i32_51 dim 1 : vector<8x128xf32>, i32 -> vector<8x128xf32>
    %106 = arith.mulf %104, %105 : vector<8x128xf32>
    %107 = vector.extract_strided_slice %106 {offsets = [0, 0], sizes = [8, 32], strides = [1, 1]} : vector<8x128xf32> to vector<8x32xf32>
    %108 = vector.extract_strided_slice %104 {offsets = [0, 32], sizes = [8, 32], strides = [1, 1]} : vector<8x128xf32> to vector<8x32xf32>
    %109 = vector.extract_strided_slice %104 {offsets = [0, 96], sizes = [8, 32], strides = [1, 1]} : vector<8x128xf32> to vector<8x32xf32>
    %110 = arith.mulf %108, %88 : vector<8x32xf32>
    %111 = arith.addf %110, %107 : vector<8x32xf32>
    %112 = math.tanh %111 : vector<8x32xf32>
    %113 = arith.mulf %109, %112 : vector<8x32xf32>
    %c3_52 = arith.constant 3 : index
    %c0_53 = arith.constant 0 : index
    %c0_54 = arith.constant 0 : index
    %114 = vector.load %arg21[%c3_52, %c0_53, %c0_54] : memref<8x8x32xf32, #tpu.memory_space<vmem>>, vector<1x8x32xf32>
    %115 = vector.shape_cast %114 : vector<1x8x32xf32> to vector<8x32xf32>
    %116 = vector.shape_cast %113 : vector<8x32xf32> to vector<1x8x32xf32>
    tpu.vector_store %arg21[%c3_52, %c0_53, %c0_54], %116 {strides = array<i32>} : memref<8x8x32xf32, #tpu.memory_space<vmem>>, vector<1x8x32xf32>,
    %c4 = arith.constant 4 : index
    %c0_55 = arith.constant 0 : index
    %c0_56 = arith.constant 0 : index
    %117 = vector.load %arg20[%c4, %c0_55, %c0_56] : memref<8x8x128xf32, #tpu.memory_space<vmem>>, vector<1x8x128xf32>
    %118 = vector.shape_cast %117 : vector<1x8x128xf32> to vector<8x128xf32>
    %cst_57 = arith.constant dense<0.000000e+00> : vector<8x128xf32>
    %119 = tpu.matmul %113, %16, %cst_57 {dimension_numbers = #tpu.dot_dimension_numbers<[1], [0], [0], [1], [0, 0, 1, 1], [], []>} : vector<8x32xf32>, vector<32x128xf32>, vector<8x128xf32> -> vector<8x128xf32>
    %120 = arith.addf %118, %119 : vector<8x128xf32>
    %121 = arith.negf %120 : vector<8x128xf32>
    %122 = math.exp %121 : vector<8x128xf32>
    %cst_58 = arith.constant 1.000000e+00 : f32
    %123 = vector.broadcast %cst_58 : f32 to vector<8x128xf32>
    %124 = arith.addf %123, %122 : vector<8x128xf32>
    %125 = arith.divf %123, %124 : vector<8x128xf32>
    %126 = math.tanh %120 : vector<8x128xf32>
    %127 = arith.select %14, %126, %125 : vector<8x128xi1>, vector<8x128xf32>
    %c64_i32_59 = arith.constant 64 : i32
    %128 = tpu.dynamic_rotate %127 by %c64_i32_59 dim 1 : vector<8x128xf32>, i32 -> vector<8x128xf32>
    %129 = arith.mulf %127, %128 : vector<8x128xf32>
    %130 = vector.extract_strided_slice %129 {offsets = [0, 0], sizes = [8, 32], strides = [1, 1]} : vector<8x128xf32> to vector<8x32xf32>
    %131 = vector.extract_strided_slice %127 {offsets = [0, 32], sizes = [8, 32], strides = [1, 1]} : vector<8x128xf32> to vector<8x32xf32>
    %132 = vector.extract_strided_slice %127 {offsets = [0, 96], sizes = [8, 32], strides = [1, 1]} : vector<8x128xf32> to vector<8x32xf32>
    %133 = arith.mulf %131, %111 : vector<8x32xf32>
    %134 = arith.addf %133, %130 : vector<8x32xf32>
    %135 = math.tanh %134 : vector<8x32xf32>
    %136 = arith.mulf %132, %135 : vector<8x32xf32>
    %c4_60 = arith.constant 4 : index
    %c0_61 = arith.constant 0 : index
    %c0_62 = arith.constant 0 : index
    %137 = vector.load %arg21[%c4_60, %c0_61, %c0_62] : memref<8x8x32xf32, #tpu.memory_space<vmem>>, vector<1x8x32xf32>
    %138 = vector.shape_cast %137 : vector<1x8x32xf32> to vector<8x32xf32>
    %139 = vector.shape_cast %136 : vector<8x32xf32> to vector<1x8x32xf32>
    tpu.vector_store %arg21[%c4_60, %c0_61, %c0_62], %139 {strides = array<i32>} : memref<8x8x32xf32, #tpu.memory_space<vmem>>, vector<1x8x32xf32>,
    %c5 = arith.constant 5 : index
    %c0_63 = arith.constant 0 : index
    %c0_64 = arith.constant 0 : index
    %140 = vector.load %arg20[%c5, %c0_63, %c0_64] : memref<8x8x128xf32, #tpu.memory_space<vmem>>, vector<1x8x128xf32>
    %141 = vector.shape_cast %140 : vector<1x8x128xf32> to vector<8x128xf32>
    %cst_65 = arith.constant dense<0.000000e+00> : vector<8x128xf32>
    %142 = tpu.matmul %136, %16, %cst_65 {dimension_numbers = #tpu.dot_dimension_numbers<[1], [0], [0], [1], [0, 0, 1, 1], [], []>} : vector<8x32xf32>, vector<32x128xf32>, vector<8x128xf32> -> vector<8x128xf32>
    %143 = arith.addf %141, %142 : vector<8x128xf32>
    %144 = arith.negf %143 : vector<8x128xf32>
    %145 = math.exp %144 : vector<8x128xf32>
    %cst_66 = arith.constant 1.000000e+00 : f32
    %146 = vector.broadcast %cst_66 : f32 to vector<8x128xf32>
    %147 = arith.addf %146, %145 : vector<8x128xf32>
    %148 = arith.divf %146, %147 : vector<8x128xf32>
    %149 = math.tanh %143 : vector<8x128xf32>
    %150 = arith.select %14, %149, %148 : vector<8x128xi1>, vector<8x128xf32>
    %c64_i32_67 = arith.constant 64 : i32
    %151 = tpu.dynamic_rotate %150 by %c64_i32_67 dim 1 : vector<8x128xf32>, i32 -> vector<8x128xf32>
    %152 = arith.mulf %150, %151 : vector<8x128xf32>
    %153 = vector.extract_strided_slice %152 {offsets = [0, 0], sizes = [8, 32], strides = [1, 1]} : vector<8x128xf32> to vector<8x32xf32>
    %154 = vector.extract_strided_slice %150 {offsets = [0, 32], sizes = [8, 32], strides = [1, 1]} : vector<8x128xf32> to vector<8x32xf32>
    %155 = vector.extract_strided_slice %150 {offsets = [0, 96], sizes = [8, 32], strides = [1, 1]} : vector<8x128xf32> to vector<8x32xf32>
    %156 = arith.mulf %154, %134 : vector<8x32xf32>
    %157 = arith.addf %156, %153 : vector<8x32xf32>
    %158 = math.tanh %157 : vector<8x32xf32>
    %159 = arith.mulf %155, %158 : vector<8x32xf32>
    %c5_68 = arith.constant 5 : index
    %c0_69 = arith.constant 0 : index
    %c0_70 = arith.constant 0 : index
    %160 = vector.load %arg21[%c5_68, %c0_69, %c0_70] : memref<8x8x32xf32, #tpu.memory_space<vmem>>, vector<1x8x32xf32>
    %161 = vector.shape_cast %160 : vector<1x8x32xf32> to vector<8x32xf32>
    %162 = vector.shape_cast %159 : vector<8x32xf32> to vector<1x8x32xf32>
    tpu.vector_store %arg21[%c5_68, %c0_69, %c0_70], %162 {strides = array<i32>} : memref<8x8x32xf32, #tpu.memory_space<vmem>>, vector<1x8x32xf32>,
    %c6 = arith.constant 6 : index
    %c0_71 = arith.constant 0 : index
    %c0_72 = arith.constant 0 : index
    %163 = vector.load %arg20[%c6, %c0_71, %c0_72] : memref<8x8x128xf32, #tpu.memory_space<vmem>>, vector<1x8x128xf32>
    %164 = vector.shape_cast %163 : vector<1x8x128xf32> to vector<8x128xf32>
    %cst_73 = arith.constant dense<0.000000e+00> : vector<8x128xf32>
    %165 = tpu.matmul %159, %16, %cst_73 {dimension_numbers = #tpu.dot_dimension_numbers<[1], [0], [0], [1], [0, 0, 1, 1], [], []>} : vector<8x32xf32>, vector<32x128xf32>, vector<8x128xf32> -> vector<8x128xf32>
    %166 = arith.addf %164, %165 : vector<8x128xf32>
    %167 = arith.negf %166 : vector<8x128xf32>
    %168 = math.exp %167 : vector<8x128xf32>
    %cst_74 = arith.constant 1.000000e+00 : f32
    %169 = vector.broadcast %cst_74 : f32 to vector<8x128xf32>
    %170 = arith.addf %169, %168 : vector<8x128xf32>
    %171 = arith.divf %169, %170 : vector<8x128xf32>
    %172 = math.tanh %166 : vector<8x128xf32>
    %173 = arith.select %14, %172, %171 : vector<8x128xi1>, vector<8x128xf32>
    %c64_i32_75 = arith.constant 64 : i32
    %174 = tpu.dynamic_rotate %173 by %c64_i32_75 dim 1 : vector<8x128xf32>, i32 -> vector<8x128xf32>
    %175 = arith.mulf %173, %174 : vector<8x128xf32>
    %176 = vector.extract_strided_slice %175 {offsets = [0, 0], sizes = [8, 32], strides = [1, 1]} : vector<8x128xf32> to vector<8x32xf32>
    %177 = vector.extract_strided_slice %173 {offsets = [0, 32], sizes = [8, 32], strides = [1, 1]} : vector<8x128xf32> to vector<8x32xf32>
    %178 = vector.extract_strided_slice %173 {offsets = [0, 96], sizes = [8, 32], strides = [1, 1]} : vector<8x128xf32> to vector<8x32xf32>
    %179 = arith.mulf %177, %157 : vector<8x32xf32>
    %180 = arith.addf %179, %176 : vector<8x32xf32>
    %181 = math.tanh %180 : vector<8x32xf32>
    %182 = arith.mulf %178, %181 : vector<8x32xf32>
    %c6_76 = arith.constant 6 : index
    %c0_77 = arith.constant 0 : index
    %c0_78 = arith.constant 0 : index
    %183 = vector.load %arg21[%c6_76, %c0_77, %c0_78] : memref<8x8x32xf32, #tpu.memory_space<vmem>>, vector<1x8x32xf32>
    %184 = vector.shape_cast %183 : vector<1x8x32xf32> to vector<8x32xf32>
    %185 = vector.shape_cast %182 : vector<8x32xf32> to vector<1x8x32xf32>
    tpu.vector_store %arg21[%c6_76, %c0_77, %c0_78], %185 {strides = array<i32>} : memref<8x8x32xf32, #tpu.memory_space<vmem>>, vector<1x8x32xf32>,
    %c7 = arith.constant 7 : index
    %c0_79 = arith.constant 0 : index
    %c0_80 = arith.constant 0 : index
    %186 = vector.load %arg20[%c7, %c0_79, %c0_80] : memref<8x8x128xf32, #tpu.memory_space<vmem>>, vector<1x8x128xf32>
    %187 = vector.shape_cast %186 : vector<1x8x128xf32> to vector<8x128xf32>
    %cst_81 = arith.constant dense<0.000000e+00> : vector<8x128xf32>
    %188 = tpu.matmul %182, %16, %cst_81 {dimension_numbers = #tpu.dot_dimension_numbers<[1], [0], [0], [1], [0, 0, 1, 1], [], []>} : vector<8x32xf32>, vector<32x128xf32>, vector<8x128xf32> -> vector<8x128xf32>
    %189 = arith.addf %187, %188 : vector<8x128xf32>
    %190 = arith.negf %189 : vector<8x128xf32>
    %191 = math.exp %190 : vector<8x128xf32>
    %cst_82 = arith.constant 1.000000e+00 : f32
    %192 = vector.broadcast %cst_82 : f32 to vector<8x128xf32>
    %193 = arith.addf %192, %191 : vector<8x128xf32>
    %194 = arith.divf %192, %193 : vector<8x128xf32>
    %195 = math.tanh %189 : vector<8x128xf32>
    %196 = arith.select %14, %195, %194 : vector<8x128xi1>, vector<8x128xf32>
    %c64_i32_83 = arith.constant 64 : i32
    %197 = tpu.dynamic_rotate %196 by %c64_i32_83 dim 1 : vector<8x128xf32>, i32 -> vector<8x128xf32>
    %198 = arith.mulf %196, %197 : vector<8x128xf32>
    %199 = vector.extract_strided_slice %198 {offsets = [0, 0], sizes = [8, 32], strides = [1, 1]} : vector<8x128xf32> to vector<8x32xf32>
    %200 = vector.extract_strided_slice %196 {offsets = [0, 32], sizes = [8, 32], strides = [1, 1]} : vector<8x128xf32> to vector<8x32xf32>
    %201 = vector.extract_strided_slice %196 {offsets = [0, 96], sizes = [8, 32], strides = [1, 1]} : vector<8x128xf32> to vector<8x32xf32>
    %202 = arith.mulf %200, %180 : vector<8x32xf32>
    %203 = arith.addf %202, %199 : vector<8x32xf32>
    %204 = math.tanh %203 : vector<8x32xf32>
    %205 = arith.mulf %201, %204 : vector<8x32xf32>
    %c7_84 = arith.constant 7 : index
    %c0_85 = arith.constant 0 : index
    %c0_86 = arith.constant 0 : index
    %206 = vector.load %arg21[%c7_84, %c0_85, %c0_86] : memref<8x8x32xf32, #tpu.memory_space<vmem>>, vector<1x8x32xf32>
    %207 = vector.shape_cast %206 : vector<1x8x32xf32> to vector<8x32xf32>
    %208 = vector.shape_cast %205 : vector<8x32xf32> to vector<1x8x32xf32>
    tpu.vector_store %arg21[%c7_84, %c0_85, %c0_86], %208 {strides = array<i32>} : memref<8x8x32xf32, #tpu.memory_space<vmem>>, vector<1x8x32xf32>,
    %c0_87 = arith.constant 0 : index
    %c0_88 = arith.constant 0 : index
    %c0_89 = arith.constant 0 : index
    %209 = vector.load %arg21[%c0_87, %c0_88, %c0_89] : memref<8x8x32xf32, #tpu.memory_space<vmem>>, vector<8x8x32xf32>
    %210 = vector.shape_cast %209 : vector<8x8x32xf32> to vector<64x32xf32>
    %c0_90 = arith.constant 0 : index
    %c0_91 = arith.constant 0 : index
    %211 = vector.load %arg8[%c0_90, %c0_91] : memref<32x128xf32, #tpu.memory_space<vmem>>, vector<32x128xf32>
    %c0_92 = arith.constant 0 : index
    %c0_93 = arith.constant 0 : index
    %212 = vector.load %arg9[%c0_92, %c0_93] : memref<32x128xf32, #tpu.memory_space<vmem>>, vector<32x128xf32>
    %c0_94 = arith.constant 0 : index
    %c0_95 = arith.constant 0 : index
    %213 = vector.load %arg10[%c0_94, %c0_95] : memref<1x128xf32, #tpu.memory_space<vmem>>, vector<1x128xf32>
    %cst_96 = arith.constant dense<0.000000e+00> : vector<64x128xf32>
    %214 = tpu.matmul %210, %211, %cst_96 {dimension_numbers = #tpu.dot_dimension_numbers<[1], [0], [0], [1], [0, 0, 1, 1], [], []>} : vector<64x32xf32>, vector<32x128xf32>, vector<64x128xf32> -> vector<64x128xf32>
    %215 = vector.broadcast %213 : vector<1x128xf32> to vector<64x128xf32>
    %216 = arith.addf %214, %215 : vector<64x128xf32>
    %217 = vector.shape_cast %216 : vector<64x128xf32> to vector<8x8x128xf32>
    %c0_97 = arith.constant 0 : index
    %c0_98 = arith.constant 0 : index
    %c0_99 = arith.constant 0 : index
    %218 = vector.load %arg20[%c0_97, %c0_98, %c0_99] : memref<8x8x128xf32, #tpu.memory_space<vmem>>, vector<8x8x128xf32>
    tpu.vector_store %arg20[%c0_97, %c0_98, %c0_99], %217 {strides = array<i32>} : memref<8x8x128xf32, #tpu.memory_space<vmem>>, vector<8x8x128xf32>,
    %cst_100 = arith.constant 0.000000e+00 : f32
    %219 = vector.broadcast %cst_100 : f32 to vector<8x32xf32>
    %cst_101 = arith.constant 0.000000e+00 : f32
    %220 = vector.broadcast %cst_101 : f32 to vector<8x32xf32>
    %cst_102 = arith.constant 0.000000e+00 : f32
    %221 = vector.broadcast %cst_102 : f32 to vector<8x32xf32>
    %c0_103 = arith.constant 0 : index
    %c0_104 = arith.constant 0 : index
    %c0_105 = arith.constant 0 : index
    %222 = vector.load %arg20[%c0_103, %c0_104, %c0_105] : memref<8x8x128xf32, #tpu.memory_space<vmem>>, vector<1x8x128xf32>
    %223 = vector.shape_cast %222 : vector<1x8x128xf32> to vector<8x128xf32>
    %cst_106 = arith.constant dense<0.000000e+00> : vector<8x128xf32>
    %224 = tpu.matmul %219, %212, %cst_106 {dimension_numbers = #tpu.dot_dimension_numbers<[1], [0], [0], [1], [0, 0, 1, 1], [], []>} : vector<8x32xf32>, vector<32x128xf32>, vector<8x128xf32> -> vector<8x128xf32>
    %225 = arith.addf %223, %224 : vector<8x128xf32>
    %226 = arith.negf %225 : vector<8x128xf32>
    %227 = math.exp %226 : vector<8x128xf32>
    %cst_107 = arith.constant 1.000000e+00 : f32
    %228 = vector.broadcast %cst_107 : f32 to vector<8x128xf32>
    %229 = arith.addf %228, %227 : vector<8x128xf32>
    %230 = arith.divf %228, %229 : vector<8x128xf32>
    %231 = math.tanh %225 : vector<8x128xf32>
    %232 = arith.select %14, %231, %230 : vector<8x128xi1>, vector<8x128xf32>
    %c64_i32_108 = arith.constant 64 : i32
    %233 = tpu.dynamic_rotate %232 by %c64_i32_108 dim 1 : vector<8x128xf32>, i32 -> vector<8x128xf32>
    %234 = arith.mulf %232, %233 : vector<8x128xf32>
    %235 = vector.extract_strided_slice %234 {offsets = [0, 0], sizes = [8, 32], strides = [1, 1]} : vector<8x128xf32> to vector<8x32xf32>
    %236 = vector.extract_strided_slice %232 {offsets = [0, 32], sizes = [8, 32], strides = [1, 1]} : vector<8x128xf32> to vector<8x32xf32>
    %237 = vector.extract_strided_slice %232 {offsets = [0, 96], sizes = [8, 32], strides = [1, 1]} : vector<8x128xf32> to vector<8x32xf32>
    %238 = arith.mulf %236, %220 : vector<8x32xf32>
    %239 = arith.addf %238, %235 : vector<8x32xf32>
    %240 = math.tanh %239 : vector<8x32xf32>
    %241 = arith.mulf %237, %240 : vector<8x32xf32>
    %242 = arith.addf %221, %241 : vector<8x32xf32>
    %c1_109 = arith.constant 1 : index
    %c0_110 = arith.constant 0 : index
    %c0_111 = arith.constant 0 : index
    %243 = vector.load %arg20[%c1_109, %c0_110, %c0_111] : memref<8x8x128xf32, #tpu.memory_space<vmem>>, vector<1x8x128xf32>
    %244 = vector.shape_cast %243 : vector<1x8x128xf32> to vector<8x128xf32>
    %cst_112 = arith.constant dense<0.000000e+00> : vector<8x128xf32>
    %245 = tpu.matmul %241, %212, %cst_112 {dimension_numbers = #tpu.dot_dimension_numbers<[1], [0], [0], [1], [0, 0, 1, 1], [], []>} : vector<8x32xf32>, vector<32x128xf32>, vector<8x128xf32> -> vector<8x128xf32>
    %246 = arith.addf %244, %245 : vector<8x128xf32>
    %247 = arith.negf %246 : vector<8x128xf32>
    %248 = math.exp %247 : vector<8x128xf32>
    %cst_113 = arith.constant 1.000000e+00 : f32
    %249 = vector.broadcast %cst_113 : f32 to vector<8x128xf32>
    %250 = arith.addf %249, %248 : vector<8x128xf32>
    %251 = arith.divf %249, %250 : vector<8x128xf32>
    %252 = math.tanh %246 : vector<8x128xf32>
    %253 = arith.select %14, %252, %251 : vector<8x128xi1>, vector<8x128xf32>
    %c64_i32_114 = arith.constant 64 : i32
    %254 = tpu.dynamic_rotate %253 by %c64_i32_114 dim 1 : vector<8x128xf32>, i32 -> vector<8x128xf32>
    %255 = arith.mulf %253, %254 : vector<8x128xf32>
    %256 = vector.extract_strided_slice %255 {offsets = [0, 0], sizes = [8, 32], strides = [1, 1]} : vector<8x128xf32> to vector<8x32xf32>
    %257 = vector.extract_strided_slice %253 {offsets = [0, 32], sizes = [8, 32], strides = [1, 1]} : vector<8x128xf32> to vector<8x32xf32>
    %258 = vector.extract_strided_slice %253 {offsets = [0, 96], sizes = [8, 32], strides = [1, 1]} : vector<8x128xf32> to vector<8x32xf32>
    %259 = arith.mulf %257, %239 : vector<8x32xf32>
    %260 = arith.addf %259, %256 : vector<8x32xf32>
    %261 = math.tanh %260 : vector<8x32xf32>
    %262 = arith.mulf %258, %261 : vector<8x32xf32>
    %263 = arith.addf %242, %262 : vector<8x32xf32>
    %c2_115 = arith.constant 2 : index
    %c0_116 = arith.constant 0 : index
    %c0_117 = arith.constant 0 : index
    %264 = vector.load %arg20[%c2_115, %c0_116, %c0_117] : memref<8x8x128xf32, #tpu.memory_space<vmem>>, vector<1x8x128xf32>
    %265 = vector.shape_cast %264 : vector<1x8x128xf32> to vector<8x128xf32>
    %cst_118 = arith.constant dense<0.000000e+00> : vector<8x128xf32>
    %266 = tpu.matmul %262, %212, %cst_118 {dimension_numbers = #tpu.dot_dimension_numbers<[1], [0], [0], [1], [0, 0, 1, 1], [], []>} : vector<8x32xf32>, vector<32x128xf32>, vector<8x128xf32> -> vector<8x128xf32>
    %267 = arith.addf %265, %266 : vector<8x128xf32>
    %268 = arith.negf %267 : vector<8x128xf32>
    %269 = math.exp %268 : vector<8x128xf32>
    %cst_119 = arith.constant 1.000000e+00 : f32
    %270 = vector.broadcast %cst_119 : f32 to vector<8x128xf32>
    %271 = arith.addf %270, %269 : vector<8x128xf32>
    %272 = arith.divf %270, %271 : vector<8x128xf32>
    %273 = math.tanh %267 : vector<8x128xf32>
    %274 = arith.select %14, %273, %272 : vector<8x128xi1>, vector<8x128xf32>
    %c64_i32_120 = arith.constant 64 : i32
    %275 = tpu.dynamic_rotate %274 by %c64_i32_120 dim 1 : vector<8x128xf32>, i32 -> vector<8x128xf32>
    %276 = arith.mulf %274, %275 : vector<8x128xf32>
    %277 = vector.extract_strided_slice %276 {offsets = [0, 0], sizes = [8, 32], strides = [1, 1]} : vector<8x128xf32> to vector<8x32xf32>
    %278 = vector.extract_strided_slice %274 {offsets = [0, 32], sizes = [8, 32], strides = [1, 1]} : vector<8x128xf32> to vector<8x32xf32>
    %279 = vector.extract_strided_slice %274 {offsets = [0, 96], sizes = [8, 32], strides = [1, 1]} : vector<8x128xf32> to vector<8x32xf32>
    %280 = arith.mulf %278, %260 : vector<8x32xf32>
    %281 = arith.addf %280, %277 : vector<8x32xf32>
    %282 = math.tanh %281 : vector<8x32xf32>
    %283 = arith.mulf %279, %282 : vector<8x32xf32>
    %284 = arith.addf %263, %283 : vector<8x32xf32>
    %c3_121 = arith.constant 3 : index
    %c0_122 = arith.constant 0 : index
    %c0_123 = arith.constant 0 : index
    %285 = vector.load %arg20[%c3_121, %c0_122, %c0_123] : memref<8x8x128xf32, #tpu.memory_space<vmem>>, vector<1x8x128xf32>
    %286 = vector.shape_cast %285 : vector<1x8x128xf32> to vector<8x128xf32>
    %cst_124 = arith.constant dense<0.000000e+00> : vector<8x128xf32>
    %287 = tpu.matmul %283, %212, %cst_124 {dimension_numbers = #tpu.dot_dimension_numbers<[1], [0], [0], [1], [0, 0, 1, 1], [], []>} : vector<8x32xf32>, vector<32x128xf32>, vector<8x128xf32> -> vector<8x128xf32>
    %288 = arith.addf %286, %287 : vector<8x128xf32>
    %289 = arith.negf %288 : vector<8x128xf32>
    %290 = math.exp %289 : vector<8x128xf32>
    %cst_125 = arith.constant 1.000000e+00 : f32
    %291 = vector.broadcast %cst_125 : f32 to vector<8x128xf32>
    %292 = arith.addf %291, %290 : vector<8x128xf32>
    %293 = arith.divf %291, %292 : vector<8x128xf32>
    %294 = math.tanh %288 : vector<8x128xf32>
    %295 = arith.select %14, %294, %293 : vector<8x128xi1>, vector<8x128xf32>
    %c64_i32_126 = arith.constant 64 : i32
    %296 = tpu.dynamic_rotate %295 by %c64_i32_126 dim 1 : vector<8x128xf32>, i32 -> vector<8x128xf32>
    %297 = arith.mulf %295, %296 : vector<8x128xf32>
    %298 = vector.extract_strided_slice %297 {offsets = [0, 0], sizes = [8, 32], strides = [1, 1]} : vector<8x128xf32> to vector<8x32xf32>
    %299 = vector.extract_strided_slice %295 {offsets = [0, 32], sizes = [8, 32], strides = [1, 1]} : vector<8x128xf32> to vector<8x32xf32>
    %300 = vector.extract_strided_slice %295 {offsets = [0, 96], sizes = [8, 32], strides = [1, 1]} : vector<8x128xf32> to vector<8x32xf32>
    %301 = arith.mulf %299, %281 : vector<8x32xf32>
    %302 = arith.addf %301, %298 : vector<8x32xf32>
    %303 = math.tanh %302 : vector<8x32xf32>
    %304 = arith.mulf %300, %303 : vector<8x32xf32>
    %305 = arith.addf %284, %304 : vector<8x32xf32>
    %c4_127 = arith.constant 4 : index
    %c0_128 = arith.constant 0 : index
    %c0_129 = arith.constant 0 : index
    %306 = vector.load %arg20[%c4_127, %c0_128, %c0_129] : memref<8x8x128xf32, #tpu.memory_space<vmem>>, vector<1x8x128xf32>
    %307 = vector.shape_cast %306 : vector<1x8x128xf32> to vector<8x128xf32>
    %cst_130 = arith.constant dense<0.000000e+00> : vector<8x128xf32>
    %308 = tpu.matmul %304, %212, %cst_130 {dimension_numbers = #tpu.dot_dimension_numbers<[1], [0], [0], [1], [0, 0, 1, 1], [], []>} : vector<8x32xf32>, vector<32x128xf32>, vector<8x128xf32> -> vector<8x128xf32>
    %309 = arith.addf %307, %308 : vector<8x128xf32>
    %310 = arith.negf %309 : vector<8x128xf32>
    %311 = math.exp %310 : vector<8x128xf32>
    %cst_131 = arith.constant 1.000000e+00 : f32
    %312 = vector.broadcast %cst_131 : f32 to vector<8x128xf32>
    %313 = arith.addf %312, %311 : vector<8x128xf32>
    %314 = arith.divf %312, %313 : vector<8x128xf32>
    %315 = math.tanh %309 : vector<8x128xf32>
    %316 = arith.select %14, %315, %314 : vector<8x128xi1>, vector<8x128xf32>
    %c64_i32_132 = arith.constant 64 : i32
    %317 = tpu.dynamic_rotate %316 by %c64_i32_132 dim 1 : vector<8x128xf32>, i32 -> vector<8x128xf32>
    %318 = arith.mulf %316, %317 : vector<8x128xf32>
    %319 = vector.extract_strided_slice %318 {offsets = [0, 0], sizes = [8, 32], strides = [1, 1]} : vector<8x128xf32> to vector<8x32xf32>
    %320 = vector.extract_strided_slice %316 {offsets = [0, 32], sizes = [8, 32], strides = [1, 1]} : vector<8x128xf32> to vector<8x32xf32>
    %321 = vector.extract_strided_slice %316 {offsets = [0, 96], sizes = [8, 32], strides = [1, 1]} : vector<8x128xf32> to vector<8x32xf32>
    %322 = arith.mulf %320, %302 : vector<8x32xf32>
    %323 = arith.addf %322, %319 : vector<8x32xf32>
    %324 = math.tanh %323 : vector<8x32xf32>
    %325 = arith.mulf %321, %324 : vector<8x32xf32>
    %326 = arith.addf %305, %325 : vector<8x32xf32>
    %c5_133 = arith.constant 5 : index
    %c0_134 = arith.constant 0 : index
    %c0_135 = arith.constant 0 : index
    %327 = vector.load %arg20[%c5_133, %c0_134, %c0_135] : memref<8x8x128xf32, #tpu.memory_space<vmem>>, vector<1x8x128xf32>
    %328 = vector.shape_cast %327 : vector<1x8x128xf32> to vector<8x128xf32>
    %cst_136 = arith.constant dense<0.000000e+00> : vector<8x128xf32>
    %329 = tpu.matmul %325, %212, %cst_136 {dimension_numbers = #tpu.dot_dimension_numbers<[1], [0], [0], [1], [0, 0, 1, 1], [], []>} : vector<8x32xf32>, vector<32x128xf32>, vector<8x128xf32> -> vector<8x128xf32>
    %330 = arith.addf %328, %329 : vector<8x128xf32>
    %331 = arith.negf %330 : vector<8x128xf32>
    %332 = math.exp %331 : vector<8x128xf32>
    %cst_137 = arith.constant 1.000000e+00 : f32
    %333 = vector.broadcast %cst_137 : f32 to vector<8x128xf32>
    %334 = arith.addf %333, %332 : vector<8x128xf32>
    %335 = arith.divf %333, %334 : vector<8x128xf32>
    %336 = math.tanh %330 : vector<8x128xf32>
    %337 = arith.select %14, %336, %335 : vector<8x128xi1>, vector<8x128xf32>
    %c64_i32_138 = arith.constant 64 : i32
    %338 = tpu.dynamic_rotate %337 by %c64_i32_138 dim 1 : vector<8x128xf32>, i32 -> vector<8x128xf32>
    %339 = arith.mulf %337, %338 : vector<8x128xf32>
    %340 = vector.extract_strided_slice %339 {offsets = [0, 0], sizes = [8, 32], strides = [1, 1]} : vector<8x128xf32> to vector<8x32xf32>
    %341 = vector.extract_strided_slice %337 {offsets = [0, 32], sizes = [8, 32], strides = [1, 1]} : vector<8x128xf32> to vector<8x32xf32>
    %342 = vector.extract_strided_slice %337 {offsets = [0, 96], sizes = [8, 32], strides = [1, 1]} : vector<8x128xf32> to vector<8x32xf32>
    %343 = arith.mulf %341, %323 : vector<8x32xf32>
    %344 = arith.addf %343, %340 : vector<8x32xf32>
    %345 = math.tanh %344 : vector<8x32xf32>
    %346 = arith.mulf %342, %345 : vector<8x32xf32>
    %347 = arith.addf %326, %346 : vector<8x32xf32>
    %c6_139 = arith.constant 6 : index
    %c0_140 = arith.constant 0 : index
    %c0_141 = arith.constant 0 : index
    %348 = vector.load %arg20[%c6_139, %c0_140, %c0_141] : memref<8x8x128xf32, #tpu.memory_space<vmem>>, vector<1x8x128xf32>
    %349 = vector.shape_cast %348 : vector<1x8x128xf32> to vector<8x128xf32>
    %cst_142 = arith.constant dense<0.000000e+00> : vector<8x128xf32>
    %350 = tpu.matmul %346, %212, %cst_142 {dimension_numbers = #tpu.dot_dimension_numbers<[1], [0], [0], [1], [0, 0, 1, 1], [], []>} : vector<8x32xf32>, vector<32x128xf32>, vector<8x128xf32> -> vector<8x128xf32>
    %351 = arith.addf %349, %350 : vector<8x128xf32>
    %352 = arith.negf %351 : vector<8x128xf32>
    %353 = math.exp %352 : vector<8x128xf32>
    %cst_143 = arith.constant 1.000000e+00 : f32
    %354 = vector.broadcast %cst_143 : f32 to vector<8x128xf32>
    %355 = arith.addf %354, %353 : vector<8x128xf32>
    %356 = arith.divf %354, %355 : vector<8x128xf32>
    %357 = math.tanh %351 : vector<8x128xf32>
    %358 = arith.select %14, %357, %356 : vector<8x128xi1>, vector<8x128xf32>
    %c64_i32_144 = arith.constant 64 : i32
    %359 = tpu.dynamic_rotate %358 by %c64_i32_144 dim 1 : vector<8x128xf32>, i32 -> vector<8x128xf32>
    %360 = arith.mulf %358, %359 : vector<8x128xf32>
    %361 = vector.extract_strided_slice %360 {offsets = [0, 0], sizes = [8, 32], strides = [1, 1]} : vector<8x128xf32> to vector<8x32xf32>
    %362 = vector.extract_strided_slice %358 {offsets = [0, 32], sizes = [8, 32], strides = [1, 1]} : vector<8x128xf32> to vector<8x32xf32>
    %363 = vector.extract_strided_slice %358 {offsets = [0, 96], sizes = [8, 32], strides = [1, 1]} : vector<8x128xf32> to vector<8x32xf32>
    %364 = arith.mulf %362, %344 : vector<8x32xf32>
    %365 = arith.addf %364, %361 : vector<8x32xf32>
    %366 = math.tanh %365 : vector<8x32xf32>
    %367 = arith.mulf %363, %366 : vector<8x32xf32>
    %368 = arith.addf %347, %367 : vector<8x32xf32>
    %c7_145 = arith.constant 7 : index
    %c0_146 = arith.constant 0 : index
    %c0_147 = arith.constant 0 : index
    %369 = vector.load %arg20[%c7_145, %c0_146, %c0_147] : memref<8x8x128xf32, #tpu.memory_space<vmem>>, vector<1x8x128xf32>
    %370 = vector.shape_cast %369 : vector<1x8x128xf32> to vector<8x128xf32>
    %cst_148 = arith.constant dense<0.000000e+00> : vector<8x128xf32>
    %371 = tpu.matmul %367, %212, %cst_148 {dimension_numbers = #tpu.dot_dimension_numbers<[1], [0], [0], [1], [0, 0, 1, 1], [], []>} : vector<8x32xf32>, vector<32x128xf32>, vector<8x128xf32> -> vector<8x128xf32>
    %372 = arith.addf %370, %371 : vector<8x128xf32>
    %373 = arith.negf %372 : vector<8x128xf32>
    %374 = math.exp %373 : vector<8x128xf32>
    %cst_149 = arith.constant 1.000000e+00 : f32
    %375 = vector.broadcast %cst_149 : f32 to vector<8x128xf32>
    %376 = arith.addf %375, %374 : vector<8x128xf32>
    %377 = arith.divf %375, %376 : vector<8x128xf32>
    %378 = math.tanh %372 : vector<8x128xf32>
    %379 = arith.select %14, %378, %377 : vector<8x128xi1>, vector<8x128xf32>
    %c64_i32_150 = arith.constant 64 : i32
    %380 = tpu.dynamic_rotate %379 by %c64_i32_150 dim 1 : vector<8x128xf32>, i32 -> vector<8x128xf32>
    %381 = arith.mulf %379, %380 : vector<8x128xf32>
    %382 = vector.extract_strided_slice %381 {offsets = [0, 0], sizes = [8, 32], strides = [1, 1]} : vector<8x128xf32> to vector<8x32xf32>
    %383 = vector.extract_strided_slice %379 {offsets = [0, 32], sizes = [8, 32], strides = [1, 1]} : vector<8x128xf32> to vector<8x32xf32>
    %384 = vector.extract_strided_slice %379 {offsets = [0, 96], sizes = [8, 32], strides = [1, 1]} : vector<8x128xf32> to vector<8x32xf32>
    %385 = arith.mulf %383, %365 : vector<8x32xf32>
    %386 = arith.addf %385, %382 : vector<8x32xf32>
    %387 = math.tanh %386 : vector<8x32xf32>
    %388 = arith.mulf %384, %387 : vector<8x32xf32>
    %389 = arith.addf %368, %388 : vector<8x32xf32>
    %c0_151 = arith.constant 0 : index
    %c0_152 = arith.constant 0 : index
    %390 = vector.load %arg4[%c0_151, %c0_152] : memref<8x8xf32, #tpu.memory_space<vmem>>, vector<8x8xf32>
    %cst_153 = arith.constant dense<0.000000e+00> : vector<8x32xf32>
    %391 = tpu.matmul %390, %389, %cst_153 {dimension_numbers = #tpu.dot_dimension_numbers<[1], [0], [0], [1], [0, 0, 1, 1], [], []>} : vector<8x8xf32>, vector<8x32xf32>, vector<8x32xf32> -> vector<8x32xf32>
    %c0_154 = arith.constant 0 : index
    %c0_155 = arith.constant 0 : index
    %392 = vector.load %arg11[%c0_154, %c0_155] : memref<32x32xf32, #tpu.memory_space<vmem>>, vector<32x32xf32>
    %cst_156 = arith.constant dense<0.000000e+00> : vector<8x32xf32>
    %393 = tpu.matmul %389, %392, %cst_156 {dimension_numbers = #tpu.dot_dimension_numbers<[1], [0], [0], [1], [0, 0, 1, 1], [], []>} : vector<8x32xf32>, vector<32x32xf32>, vector<8x32xf32> -> vector<8x32xf32>
    %c0_157 = arith.constant 0 : index
    %c0_158 = arith.constant 0 : index
    %394 = vector.load %arg12[%c0_157, %c0_158] : memref<32x32xf32, #tpu.memory_space<vmem>>, vector<32x32xf32>
    %cst_159 = arith.constant dense<0.000000e+00> : vector<8x32xf32>
    %395 = tpu.matmul %391, %394, %cst_159 {dimension_numbers = #tpu.dot_dimension_numbers<[1], [0], [0], [1], [0, 0, 1, 1], [], []>} : vector<8x32xf32>, vector<32x32xf32>, vector<8x32xf32> -> vector<8x32xf32>
    %396 = arith.addf %393, %395 : vector<8x32xf32>
    %c0_160 = arith.constant 0 : index
    %c0_161 = arith.constant 0 : index
    %397 = vector.load %arg13[%c0_160, %c0_161] : memref<1x32xf32, #tpu.memory_space<vmem>>, vector<1x32xf32>
    %398 = vector.broadcast %397 : vector<1x32xf32> to vector<8x32xf32>
    %399 = arith.addf %396, %398 : vector<8x32xf32>
    %cst_162 = arith.constant 5.000000e-01 : f32
    %400 = vector.broadcast %cst_162 : f32 to vector<8x32xf32>
    %401 = arith.mulf %400, %399 : vector<8x32xf32>
    %cst_163 = arith.constant 0.707106769 : f32
    %402 = vector.broadcast %cst_163 : f32 to vector<8x32xf32>
    %403 = arith.mulf %399, %402 : vector<8x32xf32>
    %404 = math.erf %403 : vector<8x32xf32>
    %cst_164 = arith.constant 1.000000e+00 : f32
    %405 = vector.broadcast %cst_164 : f32 to vector<8x32xf32>
    %406 = arith.addf %405, %404 : vector<8x32xf32>
    %407 = arith.mulf %401, %406 : vector<8x32xf32>
    %c0_165 = arith.constant 0 : index
    %c0_166 = arith.constant 0 : index
    %408 = vector.load %arg14[%c0_165, %c0_166] : memref<32x32xf32, #tpu.memory_space<vmem>>, vector<32x32xf32>
    %cst_167 = arith.constant dense<0.000000e+00> : vector<8x32xf32>
    %409 = tpu.matmul %407, %408, %cst_167 {dimension_numbers = #tpu.dot_dimension_numbers<[1], [0], [0], [1], [0, 0, 1, 1], [], []>} : vector<8x32xf32>, vector<32x32xf32>, vector<8x32xf32> -> vector<8x32xf32>
    %c0_168 = arith.constant 0 : index
    %c0_169 = arith.constant 0 : index
    %410 = vector.load %arg15[%c0_168, %c0_169] : memref<1x32xf32, #tpu.memory_space<vmem>>, vector<1x32xf32>
    %411 = vector.broadcast %410 : vector<1x32xf32> to vector<8x32xf32>
    %412 = arith.addf %409, %411 : vector<8x32xf32>
    %cst_170 = arith.constant 0.000000e+00 : f32
    %413 = vector.broadcast %cst_170 : f32 to vector<8x32xf32>
    %414 = arith.maximumf %412, %413 : vector<8x32xf32>
    %415 = arith.addf %407, %414 : vector<8x32xf32>
    %c0_171 = arith.constant 0 : index
    %c0_172 = arith.constant 0 : index
    %416 = vector.load %arg16[%c0_171, %c0_172] : memref<32x256xf32, #tpu.memory_space<vmem>>, vector<32x256xf32>
    %cst_173 = arith.constant dense<0.000000e+00> : vector<8x256xf32>
    %417 = tpu.matmul %415, %416, %cst_173 {dimension_numbers = #tpu.dot_dimension_numbers<[1], [0], [0], [1], [0, 0, 1, 1], [], []>} : vector<8x32xf32>, vector<32x256xf32>, vector<8x256xf32> -> vector<8x256xf32>
    %c0_174 = arith.constant 0 : index
    %c0_175 = arith.constant 0 : index
    %418 = vector.load %arg17[%c0_174, %c0_175] : memref<1x256xf32, #tpu.memory_space<vmem>>, vector<1x256xf32>
    %419 = vector.broadcast %418 : vector<1x256xf32> to vector<8x256xf32>
    %420 = arith.addf %417, %419 : vector<8x256xf32>
    %c0_176 = arith.constant 0 : index
    %c0_177 = arith.constant 0 : index
    %421 = vector.load %arg18[%c0_176, %c0_177] : memref<8x256xf32, #tpu.memory_space<vmem>>, vector<8x256xf32>
    tpu.vector_store %arg18[%c0_176, %c0_177], %420 {strides = array<i32>} : memref<8x256xf32, #tpu.memory_space<vmem>>, vector<8x256xf32>,
    %422 = vector.extract_strided_slice %420 {offsets = [0, 0], sizes = [8, 8], strides = [1, 1]} : vector<8x256xf32> to vector<8x8xf32>
    %c0_i32 = arith.constant 0 : i32
    %423 = vector.broadcast %c0_i32 : i32 to vector<8x8xi32>
    %424 = vector.extract_strided_slice %420 {offsets = [0, 8], sizes = [8, 8], strides = [1, 1]} : vector<8x256xf32> to vector<8x8xf32>
    %425 = arith.cmpf ogt, %424, %422 : vector<8x8xf32>
    %426 = arith.select %425, %424, %422 : vector<8x8xi1>, vector<8x8xf32>
    %c1_i32 = arith.constant 1 : i32
    %427 = vector.broadcast %c1_i32 : i32 to vector<8x8xi32>
    %428 = arith.select %425, %427, %423 : vector<8x8xi1>, vector<8x8xi32>
    %429 = vector.extract_strided_slice %420 {offsets = [0, 16], sizes = [8, 8], strides = [1, 1]} : vector<8x256xf32> to vector<8x8xf32>
    %430 = arith.cmpf ogt, %429, %426 : vector<8x8xf32>
    %431 = arith.select %430, %429, %426 : vector<8x8xi1>, vector<8x8xf32>
    %c2_i32 = arith.constant 2 : i32
    %432 = vector.broadcast %c2_i32 : i32 to vector<8x8xi32>
    %433 = arith.select %430, %432, %428 : vector<8x8xi1>, vector<8x8xi32>
    %434 = vector.extract_strided_slice %420 {offsets = [0, 24], sizes = [8, 8], strides = [1, 1]} : vector<8x256xf32> to vector<8x8xf32>
    %435 = arith.cmpf ogt, %434, %431 : vector<8x8xf32>
    %436 = arith.select %435, %434, %431 : vector<8x8xi1>, vector<8x8xf32>
    %c3_i32 = arith.constant 3 : i32
    %437 = vector.broadcast %c3_i32 : i32 to vector<8x8xi32>
    %438 = arith.select %435, %437, %433 : vector<8x8xi1>, vector<8x8xi32>
    %439 = vector.extract_strided_slice %420 {offsets = [0, 32], sizes = [8, 8], strides = [1, 1]} : vector<8x256xf32> to vector<8x8xf32>
    %440 = arith.cmpf ogt, %439, %436 : vector<8x8xf32>
    %441 = arith.select %440, %439, %436 : vector<8x8xi1>, vector<8x8xf32>
    %c4_i32 = arith.constant 4 : i32
    %442 = vector.broadcast %c4_i32 : i32 to vector<8x8xi32>
    %443 = arith.select %440, %442, %438 : vector<8x8xi1>, vector<8x8xi32>
    %444 = vector.extract_strided_slice %420 {offsets = [0, 40], sizes = [8, 8], strides = [1, 1]} : vector<8x256xf32> to vector<8x8xf32>
    %445 = arith.cmpf ogt, %444, %441 : vector<8x8xf32>
    %446 = arith.select %445, %444, %441 : vector<8x8xi1>, vector<8x8xf32>
    %c5_i32 = arith.constant 5 : i32
    %447 = vector.broadcast %c5_i32 : i32 to vector<8x8xi32>
    %448 = arith.select %445, %447, %443 : vector<8x8xi1>, vector<8x8xi32>
    %449 = vector.extract_strided_slice %420 {offsets = [0, 48], sizes = [8, 8], strides = [1, 1]} : vector<8x256xf32> to vector<8x8xf32>
    %450 = arith.cmpf ogt, %449, %446 : vector<8x8xf32>
    %451 = arith.select %450, %449, %446 : vector<8x8xi1>, vector<8x8xf32>
    %c6_i32 = arith.constant 6 : i32
    %452 = vector.broadcast %c6_i32 : i32 to vector<8x8xi32>
    %453 = arith.select %450, %452, %448 : vector<8x8xi1>, vector<8x8xi32>
    %454 = vector.extract_strided_slice %420 {offsets = [0, 56], sizes = [8, 8], strides = [1, 1]} : vector<8x256xf32> to vector<8x8xf32>
    %455 = arith.cmpf ogt, %454, %451 : vector<8x8xf32>
    %456 = arith.select %455, %454, %451 : vector<8x8xi1>, vector<8x8xf32>
    %c7_i32 = arith.constant 7 : i32
    %457 = vector.broadcast %c7_i32 : i32 to vector<8x8xi32>
    %458 = arith.select %455, %457, %453 : vector<8x8xi1>, vector<8x8xi32>
    %459 = vector.extract_strided_slice %420 {offsets = [0, 64], sizes = [8, 8], strides = [1, 1]} : vector<8x256xf32> to vector<8x8xf32>
    %460 = arith.cmpf ogt, %459, %456 : vector<8x8xf32>
    %461 = arith.select %460, %459, %456 : vector<8x8xi1>, vector<8x8xf32>
    %c8_i32 = arith.constant 8 : i32
    %462 = vector.broadcast %c8_i32 : i32 to vector<8x8xi32>
    %463 = arith.select %460, %462, %458 : vector<8x8xi1>, vector<8x8xi32>
    %464 = vector.extract_strided_slice %420 {offsets = [0, 72], sizes = [8, 8], strides = [1, 1]} : vector<8x256xf32> to vector<8x8xf32>
    %465 = arith.cmpf ogt, %464, %461 : vector<8x8xf32>
    %466 = arith.select %465, %464, %461 : vector<8x8xi1>, vector<8x8xf32>
    %c9_i32 = arith.constant 9 : i32
    %467 = vector.broadcast %c9_i32 : i32 to vector<8x8xi32>
    %468 = arith.select %465, %467, %463 : vector<8x8xi1>, vector<8x8xi32>
    %469 = vector.extract_strided_slice %420 {offsets = [0, 80], sizes = [8, 8], strides = [1, 1]} : vector<8x256xf32> to vector<8x8xf32>
    %470 = arith.cmpf ogt, %469, %466 : vector<8x8xf32>
    %471 = arith.select %470, %469, %466 : vector<8x8xi1>, vector<8x8xf32>
    %c10_i32 = arith.constant 10 : i32
    %472 = vector.broadcast %c10_i32 : i32 to vector<8x8xi32>
    %473 = arith.select %470, %472, %468 : vector<8x8xi1>, vector<8x8xi32>
    %474 = vector.extract_strided_slice %420 {offsets = [0, 88], sizes = [8, 8], strides = [1, 1]} : vector<8x256xf32> to vector<8x8xf32>
    %475 = arith.cmpf ogt, %474, %471 : vector<8x8xf32>
    %476 = arith.select %475, %474, %471 : vector<8x8xi1>, vector<8x8xf32>
    %c11_i32 = arith.constant 11 : i32
    %477 = vector.broadcast %c11_i32 : i32 to vector<8x8xi32>
    %478 = arith.select %475, %477, %473 : vector<8x8xi1>, vector<8x8xi32>
    %479 = vector.extract_strided_slice %420 {offsets = [0, 96], sizes = [8, 8], strides = [1, 1]} : vector<8x256xf32> to vector<8x8xf32>
    %480 = arith.cmpf ogt, %479, %476 : vector<8x8xf32>
    %481 = arith.select %480, %479, %476 : vector<8x8xi1>, vector<8x8xf32>
    %c12_i32 = arith.constant 12 : i32
    %482 = vector.broadcast %c12_i32 : i32 to vector<8x8xi32>
    %483 = arith.select %480, %482, %478 : vector<8x8xi1>, vector<8x8xi32>
    %484 = vector.extract_strided_slice %420 {offsets = [0, 104], sizes = [8, 8], strides = [1, 1]} : vector<8x256xf32> to vector<8x8xf32>
    %485 = arith.cmpf ogt, %484, %481 : vector<8x8xf32>
    %486 = arith.select %485, %484, %481 : vector<8x8xi1>, vector<8x8xf32>
    %c13_i32 = arith.constant 13 : i32
    %487 = vector.broadcast %c13_i32 : i32 to vector<8x8xi32>
    %488 = arith.select %485, %487, %483 : vector<8x8xi1>, vector<8x8xi32>
    %489 = vector.extract_strided_slice %420 {offsets = [0, 112], sizes = [8, 8], strides = [1, 1]} : vector<8x256xf32> to vector<8x8xf32>
    %490 = arith.cmpf ogt, %489, %486 : vector<8x8xf32>
    %491 = arith.select %490, %489, %486 : vector<8x8xi1>, vector<8x8xf32>
    %c14_i32 = arith.constant 14 : i32
    %492 = vector.broadcast %c14_i32 : i32 to vector<8x8xi32>
    %493 = arith.select %490, %492, %488 : vector<8x8xi1>, vector<8x8xi32>
    %494 = vector.extract_strided_slice %420 {offsets = [0, 120], sizes = [8, 8], strides = [1, 1]} : vector<8x256xf32> to vector<8x8xf32>
    %495 = arith.cmpf ogt, %494, %491 : vector<8x8xf32>
    %496 = arith.select %495, %494, %491 : vector<8x8xi1>, vector<8x8xf32>
    %c15_i32 = arith.constant 15 : i32
    %497 = vector.broadcast %c15_i32 : i32 to vector<8x8xi32>
    %498 = arith.select %495, %497, %493 : vector<8x8xi1>, vector<8x8xi32>
    %499 = vector.extract_strided_slice %420 {offsets = [0, 128], sizes = [8, 8], strides = [1, 1]} : vector<8x256xf32> to vector<8x8xf32>
    %500 = arith.cmpf ogt, %499, %496 : vector<8x8xf32>
    %501 = arith.select %500, %499, %496 : vector<8x8xi1>, vector<8x8xf32>
    %c16_i32 = arith.constant 16 : i32
    %502 = vector.broadcast %c16_i32 : i32 to vector<8x8xi32>
    %503 = arith.select %500, %502, %498 : vector<8x8xi1>, vector<8x8xi32>
    %504 = vector.extract_strided_slice %420 {offsets = [0, 136], sizes = [8, 8], strides = [1, 1]} : vector<8x256xf32> to vector<8x8xf32>
    %505 = arith.cmpf ogt, %504, %501 : vector<8x8xf32>
    %c17_i32 = arith.constant 17 : i32
    %506 = vector.broadcast %c17_i32 : i32 to vector<8x8xi32>
    %507 = arith.select %505, %506, %503 : vector<8x8xi1>, vector<8x8xi32>
    %c0_178 = arith.constant 0 : index
    %c0_179 = arith.constant 0 : index
    %508 = vector.load %arg19[%c0_178, %c0_179] : memref<8x8xi32, #tpu.memory_space<vmem>>, vector<8x8xi32>
    tpu.vector_store %arg19[%c0_178, %c0_179], %507 {strides = array<i32>} : memref<8x8xi32, #tpu.memory_space<vmem>>, vector<8x8xi32>,
    return
  }
}

</mosaic_0001>

<bundles_post_ra>
// kernel: forward.1
= control target key start
LH: loop header
LB: loop body
LE: loop exit
PB: predicated region body
PF: predicated region fallthrough
CT: control target
= control target key end

     0   :  { %s4668_s0 = inlined_call_operand.hbm [shape: f32[2,8,32], index: 0, kind: input, shape index: {}]   ;;  %s4669_s1 = inlined_call_operand.hbm [shape: f32[2,8,32], index: 1, kind: input, shape index: {}]   ;;  %s4670_s2 = inlined_call_operand.hbm [shape: f32[64,16], index: 2, kind: input, shape index: {}]   ;;  %s4671_s3 = inlined_call_operand.hbm [shape: f32[64,16], index: 3, kind: input, shape index: {}]   ;;  %s4672_s4 = inlined_call_operand.vmem [shape: f32[8,8], index: 4, kind: input, shape index: {}]   ;;  %s4673_s5 = inlined_call_operand.hbm [shape: f32[32,128], index: 5, kind: input, shape index: {}]   ;;  %s4674_s6 = inlined_call_operand.hbm [shape: f32[32,128], index: 6, kind: input, shape index: {}]   ;;  %s4675_s7 = inlined_call_operand.vmem [shape: f32[1,128], index: 7, kind: input, shape index: {}]   ;;  %s4676_s8 = inlined_call_operand.hbm [shape: f32[32,128], index: 8, kind: input, shape index: {}]   ;;  %s4677_s9 = inlined_call_operand.hbm [shape: f32[32,128], index: 9, kind: input, shape index: {}]   ;;  %s4678_s10 = inlined_call_operand.vmem [shape: f32[1,128], index: 10, kind: input, shape index: {}]   ;;  %s4679_s11 = inlined_call_operand.hbm [shape: f32[32,32], index: 11, kind: input, shape index: {}]   ;;  %s4680_s12 = inlined_call_operand.hbm [shape: f32[32,32], index: 12, kind: input, shape index: {}]   ;;  %s4681_s13 = inlined_call_operand.vmem [shape: f32[1,32], index: 13, kind: input, shape index: {}]   ;;  %s4682_s14 = inlined_call_operand.hbm [shape: f32[32,32], index: 14, kind: input, shape index: {}]   ;;  %s4683_s15 = inlined_call_operand.vmem [shape: f32[1,32], index: 15, kind: input, shape index: {}]   ;;  %s4684_s16 = inlined_call_operand.hbm [shape: f32[32,256], index: 16, kind: input, shape index: {}]   ;;  %s4685_s17 = inlined_call_operand.vmem [shape: f32[1,256], index: 17, kind: input, shape index: {}]   ;;  %s4686_s18 = inlined_call_operand.vmem [shape: f32[8,256], index: 18, kind: output, shape index: {0}]   ;;  %s4687_s19 = inlined_call_operand.vmem [shape: s32[8,8], index: 19, kind: output, shape index: {1}]  }
   0x1   :  { %4688 = sst [smem:[#allocation30_spill]] %s4668_s0 }
   0x2   :  { %4689 = sst [smem:[#allocation31_spill]] %s4669_s1 }
   0x3   :  { %4690 = sst [smem:[#allocation32_spill]] %s4670_s2 }
   0x4   :  { %4691 = sst [smem:[#allocation33_spill]] %s4671_s3 }
   0x5   :  { %25 = vsyncpa [#allocation5], 0 }
   0x6   :  { %26 = vsyncpa [#allocation7], 0 }
   0x7   :  { %27 = vsyncpa [#allocation10], 0 }
   0x8   :  { %28 = vsyncpa [#allocation13], 0 }
   0x9   :  { %29 = vsyncpa [#allocation16], 0 }
   0xa   :  { %30 = vsyncpa [#allocation19], 0 }
   0xb   :  { %31 = vsyncpa [#allocation22], 0  ;;  %s3954_s0 = smov [#allocation6]   ;;  %s3955_s20 = smov [#allocation9]  }
   0xc   :  { %s49_s30 = sshll.u32 %s3954_s0, 4  ;;  %s73_s21 = sshll.u32 %s3955_s20, 4  ;;  %s50_s30 = int_to_ptr.vmem [resolvable:$true] %s49_s30  ;;  %s74_s21 = int_to_ptr.vmem [resolvable:$true] %s73_s21 }
   0xd   :  { %s3708_s1 = scalar_lea.vmem %s50_s30, 256  ;;  %p3713_p1 = scmp.lt.s32.totalorder %s50_s30, %s50_s30 }
   0xe   :  { %p3709_p0 = scmp.ne.s32.totalorder %s50_s30, %s3708_s1  ;;  %p3714_p2 = scmp.lt.s32.totalorder %s3708_s1, %s3708_s1 }
  0x10   :  { %p3715_p3 = por %p3714_p2, %p3713_p1 }
  0x12   :  { %p3716_p4 = pnand %p3715_p3, %p3709_p0 }
  0x14   :  { %3719 = shalt.err (!%p3716_p4)
}
  0x15   :  { %s3956_s22 = smov 128   ;;  %s3957_s2 = smov 8  }
  0x16   :  { %s4692_s25 = sld [smem:[#allocation31_spill]]  ;;  %s3728_s3 = scalar_lea.vmem %s74_s21, 1024 }
  0x17   :  { %p3729_p5 = scmp.ne.s32.totalorder %s74_s21, %s3728_s3  ;;  %p3733_p6 = scmp.lt.s32.totalorder %s74_s21, %s74_s21 }
  0x18   :  { %p3734_p7 = scmp.lt.s32.totalorder %s3728_s3, %s3728_s3 }
  0x1a   :  { %p3735_p8 = por %p3734_p7, %p3733_p6 }
  0x1c   :  { %55 = dma.hbm_to_vmem [thread:$0]  %s4692_s25, 256, %s50_s30, [#allocation7], %s3956_s22, %s3956_s22, %s3957_s2  }
  0x1d   :  { %p3736_p9 = pnand %p3735_p8, %p3729_p5 }
  0x1f   :  { %3739 = shalt.err (!%p3736_p9)
}
  0x20   :  { %s4693_s28 = sld [smem:[#allocation33_spill]]  ;;  %s3958_s29 = smov [#allocation12]  }
  0x21   :  { %s99_s0 = sshll.u32 %s3958_s29, 4  ;;  %s3959_s20 = smov [#allocation15]   ;;  %s100_s0 = int_to_ptr.vmem [resolvable:$true] %s99_s0 }
  0x22   :  { %s125_s1 = sshll.u32 %s3959_s20, 4  ;;  %s3748_s30 = scalar_lea.vmem %s100_s0, 512  ;;  %s126_s1 = int_to_ptr.vmem [resolvable:$true] %s125_s1 }
  0x23   :  { %p3749_p10 = scmp.ne.s32.totalorder %s100_s0, %s3748_s30  ;;  %p3753_p11 = scmp.lt.s32.totalorder %s100_s0, %s100_s0 }
  0x24   :  { %p3754_p12 = scmp.lt.s32.totalorder %s3748_s30, %s3748_s30 }
  0x26   :  { %79 = dma.hbm_to_vmem [thread:$0]  %s4693_s28, 1024, %s74_s21, [#allocation10], %s3956_s22, %s3956_s22, %s3957_s2  }
  0x27   :  { %p3755_p13 = por %p3754_p12, %p3753_p11 }
  0x29   :  { %p3756_p0 = pnand %p3755_p13, %p3749_p10 }
  0x2b   :  { %3759 = shalt.err (!%p3756_p0)
}
  0x2c   :  { %105 = dma.hbm_to_vmem [thread:$0]  %s4674_s6, 512, %s100_s0, [#allocation13], %s3956_s22, %s3956_s22, %s3957_s2  }
  0x2d   :  { %s3768_s21 = scalar_lea.vmem %s126_s1, 512  ;;  %p3773_p2 = scmp.lt.s32.totalorder %s126_s1, %s126_s1 }
  0x2e   :  { %p3769_p1 = scmp.ne.s32.totalorder %s126_s1, %s3768_s21  ;;  %p3774_p3 = scmp.lt.s32.totalorder %s3768_s21, %s3768_s21 }
  0x30   :  { %p3775_p4 = por %p3774_p3, %p3773_p2 }
  0x32   :  { %p3776_p5 = pnand %p3775_p4, %p3769_p1 }
  0x34   :  { %3779 = shalt.err (!%p3776_p5)
}
  0x35   :  { %131 = dma.hbm_to_vmem [thread:$0]  %s4677_s9, 512, %s126_s1, [#allocation16], %s3956_s22, %s3956_s22, %s3957_s2  }
  0x36   :  { %s3960_s26 = smov [#allocation18]   ;;  %s3961_s28 = smov [#allocation4]  }
  0x37   :  { %s151_s27 = sshll.u32 %s3960_s26, 4  ;;  %s37_s29 = sshll.u32 %s3961_s28, 4  ;;  %s152_s27 = int_to_ptr.vmem [resolvable:$true] %s151_s27  ;;  %s38_s29 = int_to_ptr.vmem [resolvable:$true] %s37_s29 }
  0x38   :  { %s3788_s6 = scalar_lea.vmem %s152_s27, 512  ;;  %p3793_p7 = scmp.lt.s32.totalorder %s152_s27, %s152_s27 }
  0x39   :  { %p3789_p6 = scmp.ne.s32.totalorder %s152_s27, %s3788_s6  ;;  %p3794_p8 = scmp.lt.s32.totalorder %s3788_s6, %s3788_s6 }
  0x3b   :  { %p3795_p9 = por %p3794_p8, %p3793_p7 }
  0x3d   :  { %p3796_p10 = pnand %p3795_p9, %p3789_p6 }
  0x3f   :  { %3799 = shalt.err (!%p3796_p10)
}
  0x40   :  { %157 = dma.hbm_to_vmem [thread:$0]  %s4680_s12, 512, %s152_s27, [#allocation19], %s3956_s22, %s3956_s22, %s3957_s2  }
  0x41   :  { %s3808_s9 = scalar_lea.vmem %s38_s29, 256  ;;  %p3813_p12 = scmp.lt.s32.totalorder %s38_s29, %s38_s29 }
  0x42   :  { %p3809_p11 = scmp.ne.s32.totalorder %s38_s29, %s3808_s9  ;;  %p3814_p13 = scmp.lt.s32.totalorder %s3808_s9, %s3808_s9 }
  0x44   :  { %p3815_p0 = por %p3814_p13, %p3813_p12 }
  0x46   :  { %p3816_p1 = pnand %p3815_p0, %p3809_p11 }
  0x48   :  { %3819 = shalt.err (!%p3816_p1)
}
  0x49   :  { %s4694_s23 = sld [smem:[#allocation30_spill]]  ;;  %s3962_s24 = smov [#allocation8]  }
  0x4a   :  { %s61_s21 = sshll.u32 %s3962_s24, 4  ;;  %s3963_s25 = smov [#allocation11]   ;;  %s62_s21 = int_to_ptr.vmem [resolvable:$true] %s61_s21 }
  0x4b   :  { %s87_s3 = sshll.u32 %s3963_s25, 4  ;;  %s3828_s12 = scalar_lea.vmem %s62_s21, 1024  ;;  %s88_s3 = int_to_ptr.vmem [resolvable:$true] %s87_s3 }
  0x4c   :  { %p3829_p2 = scmp.ne.s32.totalorder %s62_s21, %s3828_s12  ;;  %p3833_p3 = scmp.lt.s32.totalorder %s62_s21, %s62_s21 }
  0x4d   :  { %p3834_p4 = scmp.lt.s32.totalorder %s3828_s12, %s3828_s12 }
  0x4f   :  { %43 = dma.hbm_to_vmem [thread:$0]  %s4694_s23, 256, %s38_s29, [#allocation5], %s3956_s22, %s3956_s22, %s3957_s2  }
  0x50   :  { %p3835_p5 = por %p3834_p4, %p3833_p3 }
  0x52   :  { %p3836_p6 = pnand %p3835_p5, %p3829_p2 }
  0x54   :  { %3839 = shalt.err (!%p3836_p6)
}
  0x55   :  { %s4695_s28 = sld [smem:[#allocation32_spill]]  ;;  %s3848_s29 = scalar_lea.vmem %s88_s3, 512 }
  0x56   :  { %p3849_p7 = scmp.ne.s32.totalorder %s88_s3, %s3848_s29  ;;  %p3853_p8 = scmp.lt.s32.totalorder %s88_s3, %s88_s3 }
  0x57   :  { %p3854_p9 = scmp.lt.s32.totalorder %s3848_s29, %s3848_s29 }
  0x59   :  { %p3855_p10 = por %p3854_p9, %p3853_p8 }
  0x5b   :  { %67 = dma.hbm_to_vmem [thread:$0]  %s4695_s28, 1024, %s62_s21, [#allocation7], %s3956_s22, %s3956_s22, %s3957_s2  }
  0x5c   :  { %p3856_p11 = pnand %p3855_p10, %p3849_p7 }
  0x5e   :  { %3859 = shalt.err (!%p3856_p11)
}
  0x5f   :  { %93 = dma.hbm_to_vmem [thread:$0]  %s4673_s5, 512, %s88_s3, [#allocation10], %s3956_s22, %s3956_s22, %s3957_s2  }
  0x60   :  { %s3964_s20 = smov [#allocation14]   ;;  %s3965_s1 = smov [#allocation17]  }
  0x61   :  { %s113_s9 = sshll.u32 %s3964_s20, 4  ;;  %s139_s30 = sshll.u32 %s3965_s1, 4  ;;  %s114_s9 = int_to_ptr.vmem [resolvable:$true] %s113_s9  ;;  %s140_s30 = int_to_ptr.vmem [resolvable:$true] %s139_s30 }
  0x62   :  { %s3868_s23 = scalar_lea.vmem %s114_s9, 512  ;;  %p3873_p13 = scmp.lt.s32.totalorder %s114_s9, %s114_s9 }
  0x63   :  { %p3869_p12 = scmp.ne.s32.totalorder %s114_s9, %s3868_s23  ;;  %p3874_p0 = scmp.lt.s32.totalorder %s3868_s23, %s3868_s23 }
  0x65   :  { %p3875_p1 = por %p3874_p0, %p3873_p13 }
  0x67   :  { %p3876_p2 = pnand %p3875_p1, %p3869_p12 }
  0x69   :  { %3879 = shalt.err (!%p3876_p2)
}
  0x6a   :  { %119 = dma.hbm_to_vmem [thread:$0]  %s4676_s8, 512, %s114_s9, [#allocation13], %s3956_s22, %s3956_s22, %s3957_s2  }
  0x6b   :  { %s3888_s5 = scalar_lea.vmem %s140_s30, 512  ;;  %p3893_p4 = scmp.lt.s32.totalorder %s140_s30, %s140_s30 }
  0x6c   :  { %p3889_p3 = scmp.ne.s32.totalorder %s140_s30, %s3888_s5  ;;  %p3894_p5 = scmp.lt.s32.totalorder %s3888_s5, %s3888_s5 }
  0x6e   :  { %p3895_p6 = por %p3894_p5, %p3893_p4 }
  0x70   :  { %p3896_p7 = pnand %p3895_p6, %p3889_p3 }
  0x72   :  { %3899 = shalt.err (!%p3896_p7)
}
  0x73   :  { %145 = dma.hbm_to_vmem [thread:$0]  %s4679_s11, 512, %s140_s30, [#allocation16], %s3956_s22, %s3956_s22, %s3957_s2  }
  0x74   :  { %s3966_s12 = smov [#allocation20]   ;;  %s3967_s27 = smov [#allocation21]  }
  0x75   :  { %s165_s26 = sshll.u32 %s3966_s12, 4  ;;  %s179_s28 = sshll.u32 %s3967_s27, 4  ;;  %s166_s26 = int_to_ptr.vmem [resolvable:$true] %s165_s26  ;;  %s180_s28 = int_to_ptr.vmem [resolvable:$true] %s179_s28 }
  0x76   :  { %s3908_s8 = scalar_lea.vmem %s166_s26, 512  ;;  %p3913_p9 = scmp.lt.s32.totalorder %s166_s26, %s166_s26 }
  0x77   :  { %p3909_p8 = scmp.ne.s32.totalorder %s166_s26, %s3908_s8  ;;  %p3914_p10 = scmp.lt.s32.totalorder %s3908_s8, %s3908_s8 }
  0x79   :  { %p3915_p11 = por %p3914_p10, %p3913_p9 }
  0x7b   :  { %p3916_p12 = pnand %p3915_p11, %p3909_p8 }
  0x7d   :  { %3919 = shalt.err (!%p3916_p12)
}
  0x7e   :  { %171 = dma.hbm_to_vmem [thread:$0]  %s4682_s14, 512, %s166_s26, [#allocation19], %s3956_s22, %s3956_s22, %s3957_s2  }
  0x7f   :  { %s3928_s11 = scalar_lea.vmem %s180_s28, 1024  ;;  %p3933_p0 = scmp.lt.s32.totalorder %s180_s28, %s180_s28 }
  0x80   :  { %p3929_p13 = scmp.ne.s32.totalorder %s180_s28, %s3928_s11  ;;  %p3934_p1 = scmp.lt.s32.totalorder %s3928_s11, %s3928_s11 }
  0x82   :  { %p3935_p2 = por %p3934_p1, %p3933_p0 }
  0x84   :  { %p3936_p3 = pnand %p3935_p2, %p3929_p13 }
  0x86   :  { %3939 = shalt.err (!%p3936_p3)
}
  0x87   :  { %s3968_s0 = smov 256   ;;  %s3969_s20 = smov 16  }
  0x88   :  { %185 = dma.hbm_to_vmem [thread:$0]  %s4684_s16, 1024, %s180_s28, [#allocation22], %s3968_s0, %s3968_s0, %s3969_s20  }
  0x89   :  { %3940 = dma.done.wait [#allocation5], 256  }
  0x8a   :  { %3941 = vsyncadd [#allocation5], 4294967040 }
  0x8b   :  { %3942 = dma.done.wait [#allocation7], 1280  }
  0x8c   :  { %3943 = vsyncadd [#allocation7], 4294966016 }
  0x8d   :  { %3944 = dma.done.wait [#allocation10], 1536  }
  0x8e   :  { %3945 = vsyncadd [#allocation10], 4294965760 }
  0x8f   :  { %3946 = dma.done.wait [#allocation13], 1024  }
  0x90   :  { %3947 = vsyncadd [#allocation13], 4294966272 }
  0x91   :  { %3948 = dma.done.wait [#allocation16], 1024  }
  0x92   :  { %3949 = vsyncadd [#allocation16], 4294966272 }
  0x93   :  { %3950 = dma.done.wait [#allocation19], 1024  }
  0x94   :  { %3951 = vsyncadd [#allocation19], 4294966272 }
  0x95   :  { %3952 = dma.done.wait [#allocation22], 1024  }
  0x96   :  { %3953 = vsyncadd [#allocation22], 4294966272  ;;  %v227_v0 = vld [vmem:[#allocation6 + $0x8] sm:$0xff]  ;;  %v225_v1 = vld [vmem:[#allocation4 + $0x8] sm:$0xff]  ;;  %vm244_vm0 = vcmask 130048   ;;  %v3970_v16 = vmov 0.0  }
  0x97   :  { %v226_v2 = vld [vmem:[#allocation6] sm:$0xff]  ;;  %3262 = vmatprep.subr.mxu0 %v227_v0  ;;  %3278 = vmatprep.subr.mxu1 %v225_v1  ;;  %v224_v3 = vld [vmem:[#allocation4] sm:$0xff]  ;;  %v237_v6 = vld [vmem:[#allocation9 + $0x8] sm:$0xff]  ;;  %vm3971_vm1 = vmmov 0   ;;  %vm523_vm2 = vcmask 261120   ;;  %s3973_s22 = smov 32  }
  0x98   :  { %v236_v4 = vld [vmem:[#allocation9] sm:$0xff]  ;;  %3263 = vmatpush3.msra.mxu0 %v227_v0  ;;  %3279 = vmatpush3.msra.mxu1 %v225_v1  ;;  %v229_v7 = vld [vmem:[#allocation8 + $0x8] sm:$0xff]  ;;  %v238_v8 = vld [vmem:[#allocation9 + $0x10] sm:$0xff]  ;;  %v503_v0 = vlaneseq  ;;  %vm2460_vm6 = vcmask 64512  }
  0x99   :  { %v228_v5 = vld [vmem:[#allocation8] sm:$0xff]  ;;  %3264 = vmatprep.subr.mxu0 %v226_v2  ;;  %3280 = vmatprep.subr.mxu1 %v224_v3  ;;  %v230_v9 = vld [vmem:[#allocation8 + $0x10] sm:$0xff]  ;;  %v511_v10 = vld [vmem:[#allocation11 + $0x18] sm:$0xff] }
  0x9a   :  { %3265 = vmatpush3.msra.mxu0 %v226_v2  ;;  %3266 = vmatprep.mubr.msk.f32.mxu0 %vm244_vm0, %v236_v4  ;;  %v239_v11 = vld [vmem:[#allocation9 + $0x18] sm:$0xff]  ;;  %v240_v14 = vld [vmem:[#allocation9 + $0x20] sm:$0xff]  ;;  %v510_v17 = vld [vmem:[#allocation11 + $0x10] sm:$0xff]  ;;  %v504_v1 = vand.u32 127, %v503_v0 }
  0x9b   :  { %3281 = vmatpush3.msra.mxu1 %v224_v3  ;;  %3282 = vmatprep.mubr.msk.f32.mxu1 %vm244_vm0, %v228_v5  ;;  %v231_v12 = vld [vmem:[#allocation8 + $0x18] sm:$0xff]  ;;  %v232_v15 = vld [vmem:[#allocation8 + $0x20] sm:$0xff]  ;;  %v241_v18 = vld [vmem:[#allocation9 + $0x28] sm:$0xff] }
  0x9c   :  { %3267 = vmatmul.mubr.msk.f32.vlgmr.msra.gmra.mxu0 %vm244_vm0, %v237_v6  ;;  %3283 = vmatmul.mubr.msk.f32.vlgmr.msra.gmra.mxu1 %vm244_vm0, %v229_v7  ;;  %v4151_v13 = vld [vmem:[#allocation12 + $0x18] sm:$0xff]  ;;  %v233_v19 = vld [vmem:[#allocation8 + $0x28] sm:$0xff]  ;;  %v242_v20 = vld [vmem:[#allocation9 + $0x30] sm:$0xff]  ;;  %vm505_vm3 = vcmp.ge.s32.totalorder %v504_v1, 64  ;;  %vm506_vm4 = vcmp.lt.s32.totalorder %v504_v1, 96 }
  0x9d   :  { %3269 = vmatprep.mubr.msk.f32.mxu0 %vm244_vm0, %v238_v8  ;;  %3285 = vmatprep.mubr.msk.f32.mxu1 %vm244_vm0, %v230_v9  ;;  %v234_v21 = vld [vmem:[#allocation8 + $0x30] sm:$0xff]  ;;  %v243_v22 = vld [vmem:[#allocation9 + $0x38] sm:$0xff]  ;;  %v509_v24 = vld [vmem:[#allocation11 + $0x8] sm:$0xff] }
  0x9e   :  { %3294 = vmatprep.subr.mxu0 %v511_v10  ;;  %3314 = vmatprep.subr.mxu1 %v3970_v16  ;;  %v235_v23 = vld [vmem:[#allocation8 + $0x38] sm:$0xff]  ;;  %v4166_v25 = vld [vmem:[#allocation12 + $0x10] sm:$0xff]  ;;  %v508_v26 = vld [vmem:[#allocation11] sm:$0xff] }
  0x9f   :  { %3295 = vmatpush3.msra.mxu0 %v511_v10  ;;  %3315 = vmatpush3.msra.mxu1 %v4151_v13  ;;  %v4170_v27 = vld [vmem:[#allocation12 + $0x8] sm:$0xff]  ;;  %v4174_v28 = vld [vmem:[#allocation12] sm:$0xff]  ;;  %vm4226_vm5 = vmand %vm505_vm3, %vm506_vm4 }
  0xa0   :  { %3270 = vmatmul.mubr.msk.f32.gmra.mxu0 %vm244_vm0, %v239_v11  ;;  %3286 = vmatmul.mubr.msk.f32.gmra.mxu1 %vm244_vm0, %v231_v12  ;;  %v4213_v55 = vld [vmem:[%s4675_s7] ss:$0 sm:$0xff]  ;;  %s3972_s7 = smov 64  }
  0xa1   :  { %3272 = vmatprep.mubr.msk.f32.mxu0 %vm244_vm0, %v240_v14  ;;  %3288 = vmatprep.mubr.msk.f32.mxu1 %vm244_vm0, %v232_v15 }
  0xa2   :  { %3296 = vmatprep.subr.mxu0 %v510_v17  ;;  %3316 = vmatprep.subr.mxu1 %v3970_v16 }
  0xa3   :  { %3297 = vmatpush3.msra.mxu0 %v510_v17  ;;  %3317 = vmatpush3.msra.mxu1 %v4166_v25 }
  0xa4   :  { %3273 = vmatmul.mubr.msk.f32.gmra.mxu0 %vm244_vm0, %v241_v18  ;;  %3289 = vmatmul.mubr.msk.f32.gmra.mxu1 %vm244_vm0, %v233_v19 }
  0xa5   :  { %3275 = vmatprep.mubr.msk.f32.mxu0 %vm244_vm0, %v242_v20  ;;  %3291 = vmatprep.mubr.msk.f32.mxu1 %vm244_vm0, %v234_v21 }
  0xa6   :  { %3298 = vmatprep.subr.mxu0 %v509_v24  ;;  %3318 = vmatprep.subr.mxu1 %v3970_v16 }
  0xa7   :  { %3299 = vmatpush3.msra.mxu0 %v509_v24  ;;  %3319 = vmatpush3.msra.mxu1 %v4170_v27 }
  0xa8   :  { %3276 = vmatmul.mubr.msk.f32.gmra.mxu0 %vm244_vm0, %v243_v22  ;;  %3292 = vmatmul.mubr.msk.f32.gmra.mxu1 %vm244_vm0, %v235_v23 }
  0xa9   :  { %3300 = vmatprep.subr.mxu0 %v508_v26  ;;  %3320 = vmatprep.subr.mxu1 %v3970_v16 }
  0xaa   :  { %3301 = vmatpush3.msra.mxu0 %v508_v26  ;;  %3321 = vmatpush3.msra.mxu1 %v4174_v28 }
  0xab   :  { %3336 = vmatprep.subr.mxu0 %v3970_v16  ;;  %3322 = vmatprep.mubr.msk.f32.mxu1 %vm3971_vm1, %v3970_v16 }
  0xac   :  { %3323 = vmatmul.mubr.f32.vlgmr.msra.gmra.mxu1 %v3970_v16  ;;  %3325 = vmatprep.subr.mxu1 %v3970_v16 }
  0xad   :  { %3326 = vmatpush3.msra.mxu1 %v4151_v13  ;;  %3333 = vmatprep.mubr.msk.f32.mxu1 %vm3971_vm1, %v3970_v16 }
  0xae   :  { %3327 = vmatprep.subr.mxu1 %v3970_v16 }
  0xaf   :  { %3328 = vmatpush3.msra.mxu1 %v4166_v25 }
  0xb0   :  { %3329 = vmatprep.subr.mxu1 %v3970_v16 }
  0xb1   :  { %3330 = vmatpush3.msra.mxu1 %v4170_v27 }
  0xb2   :  { %3331 = vmatprep.subr.mxu1 %v3970_v16 }
  0xb3   :  { %3332 = vmatpush3.msra.mxu1 %v4174_v28 }
  0xb4   :  { %3347 = vmatprep.subr.mxu1 %v3970_v16 }
 0x15c   :  { %v3268_v29 = vpop.f32.mrf.mxu0  ;;  %v3284_v30 = vpop.f32.mrf.mxu1 }
 0x15d   :  { %v470_v34 = vadd.f32 %v3284_v30, %v3268_v29 }
 0x15e   :  { %v335_v31 = vpop.f32.mrf.mxu0  ;;  %v464_v32 = vpop.f32.mrf.mxu1 }
 0x15f   :  { %v465_v33 = vadd.f32 %v464_v32, %v335_v31 }
 0x160   :  { %v3271_v35 = vpop.f32.mrf.mxu0  ;;  %v3287_v36 = vpop.f32.mrf.mxu1 }
 0x161   :  { %3302 = vmatprep.mubr.msk.f32.mxu0 %vm523_vm2, %v465_v33  ;;  %v480_v37 = vadd.f32 %v3287_v36, %v3271_v35 }
 0x162   :  { %3303 = vmatmul.mubr.msk.f32.vlgmr.msra.gmra.mxu0 %vm523_vm2, %v470_v34  ;;  %v345_v38 = vpop.f32.mrf.mxu0  ;;  %v474_v39 = vpop.f32.mrf.mxu1 }
 0x163   :  { %v475_v40 = vadd.f32 %v474_v39, %v345_v38  ;;  %3337 = vmatpush3.msra.mxu0 %v4151_v13 }
 0x164   :  { %v3274_v41 = vpop.f32.mrf.mxu0  ;;  %v3290_v42 = vpop.f32.mrf.mxu1  ;;  %3338 = vmatprep.subr.mxu0 %v3970_v16 }
 0x165   :  { %3305 = vmatprep.mubr.msk.f32.mxu0 %vm523_vm2, %v475_v40  ;;  %3339 = vmatpush3.msra.mxu0 %v4166_v25  ;;  %v490_v43 = vadd.f32 %v3290_v42, %v3274_v41 }
 0x166   :  { %v355_v44 = vpop.f32.mrf.mxu0  ;;  %v484_v45 = vpop.f32.mrf.mxu1  ;;  %3306 = vmatmul.mubr.msk.f32.gmra.mxu0 %vm523_vm2, %v480_v37  ;;  %3340 = vmatprep.subr.mxu0 %v3970_v16 }
 0x167   :  { %v485_v46 = vadd.f32 %v484_v45, %v355_v44  ;;  %3341 = vmatpush3.msra.mxu0 %v4170_v27 }
 0x168   :  { %v3277_v47 = vpop.f32.mrf.mxu0  ;;  %v3293_v48 = vpop.f32.mrf.mxu1  ;;  %3342 = vmatprep.subr.mxu0 %v3970_v16 }
 0x169   :  { %3308 = vmatprep.mubr.msk.f32.mxu0 %vm523_vm2, %v485_v46  ;;  %3343 = vmatpush3.msra.mxu0 %v4174_v28  ;;  %v500_v49 = vadd.f32 %v3293_v48, %v3277_v47 }
 0x16a   :  { %v365_v50 = vpop.f32.mrf.mxu0  ;;  %v494_v51 = vpop.f32.mrf.mxu1  ;;  %3309 = vmatmul.mubr.msk.f32.gmra.mxu0 %vm523_vm2, %v490_v43  ;;  %3358 = vmatprep.subr.mxu0 %v3970_v16 }
 0x16b   :  { %v495_v52 = vadd.f32 %v494_v51, %v365_v50 }
 0x16c   :  { %v731_v53 = vpop.f32.mrf.mxu1 }
 0x16d   :  { %3311 = vmatprep.mubr.msk.f32.mxu0 %vm523_vm2, %v495_v52 }
 0x16e   :  { %3312 = vmatmul.mubr.msk.f32.gmra.mxu0 %vm523_vm2, %v500_v49  ;;  %v3324_v54 = vpop.f32.mrf.mxu1 }
 0x16f   :  { %3344 = vmatprep.mubr.msk.f32.mxu0 %vm3971_vm1, %v3970_v16 }
 0x222   :  { %v3304_v56 = vpop.f32.mrf.mxu0 }
 0x223   :  { %v620_v57 = vadd.f32 %v3304_v56, %v4213_v55 }
 0x224   :  { %v614_v58 = vpop.f32.mrf.mxu0 }
 0x225   :  { %v615_v59 = vadd.f32 %v4213_v55, %v614_v58 }
 0x226   :  { %v3307_v2 = vpop.f32.mrf.mxu0 }
 0x227   :  { %v735_v60 = vadd.f32 %v731_v53, %v615_v59  ;;  %v4219_v3 = vadd.f32 %v3307_v2, %v4213_v55 }
 0x228   :  { %v4221_v4 = vpop.f32.mrf.mxu0 }
 0x229   :  { %v3075_v61 = vmul.f32 -1.442695, %v735_v60  ;;  %v625_v48 = vadd.f32 %v4213_v55, %v4221_v4 }
 0x22a   :  { %v3310_v5 = vpop.f32.mrf.mxu0 }
 0x22b   :  { %3570 = vpow2.f32 %v3075_v61  ;;  %v4224_v6 = vadd.f32 %v3310_v5, %v4213_v55 }
 0x22c   :  { %3572 = vtanh.f32 %v735_v60  ;;  %v634_v7 = vpop.f32.mrf.mxu0 }
 0x22d   :  { %v4231_v9 = vadd.f32 %v4213_v55, %v634_v7 }
 0x22e   :  { %v3313_v11 = vpop.f32.mrf.mxu0 }
 0x22f   :  { %v4234_v14 = vadd.f32 %v3313_v11, %v4213_v55 }
 0x230   :  { %v4272_v47 = vpop.f32.mrf.mxu0 }
 0x238   :  { %v3571_v62 = vpop.eup %3570 }
 0x239   :  { %v739_v63 = vadd.f32 1.0, %v3571_v62  ;;  %v3573_v10 = vpop.eup %3572 }
 0x23b   :  { %3574 = vrcp.f32 %v739_v63 }
 0x248   :  { %v3575_v12 = vpop.eup %3574 }
 0x249   :  { %v743_v15 = vsel %vm4226_vm5, %v3573_v10, %v3575_v12 }
 0x24a   :  { %744 = vrot.lane.b32.xlu0 %v743_v15, %s3972_s7  ;;  %v747_v19 = vmul.f32 0.0, %v743_v15 }
 0x2bc   :  { %v745_v17 = vpop.permute.xlu0 %744 }
 0x2bd   :  { %v746_v18 = vmul.f32 %v745_v17, %v743_v15 }
 0x2bf   :  { %749 = vrot.lane.b32.xlu0 %v746_v18, %s3973_s22 }
 0x331   :  { %v750_v20 = vpop.permute.xlu0 %749 }
 0x332   :  { %v752_v21 = vadd.f32 %v750_v20, %v747_v19 }
 0x334   :  { %3576 = vtanh.f32 %v752_v21 }
 0x341   :  { %v3577_v22 = vpop.eup %3576 }
 0x342   :  { %755 = vrot.lane.b32.xlu1 %v3577_v22, %s3972_s7 }
 0x3b4   :  { %v756_v23 = vpop.permute.xlu1 %755 }
 0x3b5   :  { %v758_v24 = vmul.f32 %v756_v23, %v743_v15 }
 0x3b7   :  { %760 = vrot.lane.b32.xlu1 %v758_v24, %s3973_s22 }
 0x429   :  { %v761_v26 = vpop.permute.xlu1 %760 }
 0x42a   :  { %763 = vst.msk [vmem:[#allocation3] sm:$0xff] %vm523_vm2, %v761_v26  ;;  %3334 = vmatmul.mubr.msk.f32.vlgmr.msra.gmra.mxu1 %vm523_vm2, %v761_v26 }
 0x42b   :  { %3348 = vmatpush3.msra.mxu1 %v4151_v13  ;;  %3355 = vmatprep.mubr.msk.f32.mxu1 %vm3971_vm1, %v3970_v16 }
 0x42c   :  { %3349 = vmatprep.subr.mxu1 %v3970_v16 }
 0x42d   :  { %3350 = vmatpush3.msra.mxu1 %v4166_v25 }
 0x42e   :  { %3351 = vmatprep.subr.mxu1 %v3970_v16 }
 0x42f   :  { %3352 = vmatpush3.msra.mxu1 %v4170_v27 }
 0x430   :  { %3353 = vmatprep.subr.mxu1 %v3970_v16 }
 0x431   :  { %3354 = vmatpush3.msra.mxu1 %v4174_v28 }
 0x432   :  { %3369 = vmatprep.subr.mxu1 %v3970_v16 }
 0x4ea   :  { %v834_v29 = vpop.f32.mrf.mxu1 }
 0x4eb   :  { %v838_v30 = vadd.f32 %v834_v29, %v620_v57 }
 0x4ec   :  { %v3335_v31 = vpop.f32.mrf.mxu1 }
 0x4ed   :  { %v3077_v32 = vmul.f32 -1.442695, %v838_v30 }
 0x4ef   :  { %3578 = vpow2.f32 %v3077_v32 }
 0x4f0   :  { %3580 = vtanh.f32 %v838_v30 }
 0x4fc   :  { %v3579_v33 = vpop.eup %3578 }
 0x4fd   :  { %v842_v34 = vadd.f32 1.0, %v3579_v33  ;;  %v3581_v35 = vpop.eup %3580 }
 0x4ff   :  { %3582 = vrcp.f32 %v842_v34 }
 0x50c   :  { %v3583_v36 = vpop.eup %3582 }
 0x50d   :  { %v846_v37 = vsel %vm4226_vm5, %v3581_v35, %v3583_v36 }
 0x50e   :  { %847 = vrot.lane.b32.xlu0 %v846_v37, %s3972_s7  ;;  %v850_v40 = vmul.f32 %v846_v37, %v752_v21 }
 0x580   :  { %v848_v38 = vpop.permute.xlu0 %847 }
 0x581   :  { %v849_v39 = vmul.f32 %v848_v38, %v846_v37 }
 0x583   :  { %852 = vrot.lane.b32.xlu1 %v849_v39, %s3973_s22 }
 0x5f5   :  { %v853_v41 = vpop.permute.xlu1 %852 }
 0x5f6   :  { %v855_v42 = vadd.f32 %v853_v41, %v850_v40 }
 0x5f8   :  { %3584 = vtanh.f32 %v855_v42 }
 0x605   :  { %v3585_v43 = vpop.eup %3584 }
 0x606   :  { %858 = vrot.lane.b32.xlu0 %v3585_v43, %s3972_s7 }
 0x678   :  { %v859_v44 = vpop.permute.xlu0 %858 }
 0x679   :  { %v861_v45 = vmul.f32 %v859_v44, %v846_v37 }
 0x67b   :  { %863 = vrot.lane.b32.xlu1 %v861_v45, %s3973_s22 }
 0x6ed   :  { %v864_v46 = vpop.permute.xlu1 %863 }
 0x6ee   :  { %867 = vst.msk [vmem:[#allocation3 + $0x8] sm:$0xff] %vm523_vm2, %v864_v46  ;;  %3345 = vmatmul.mubr.msk.f32.vlgmr.msra.gmra.mxu0 %vm523_vm2, %v864_v46 }
 0x6ef   :  { %3359 = vmatpush3.msra.mxu0 %v4151_v13  ;;  %3366 = vmatprep.mubr.msk.f32.mxu0 %vm3971_vm1, %v3970_v16 }
 0x6f0   :  { %3360 = vmatprep.subr.mxu0 %v3970_v16 }
 0x6f1   :  { %3361 = vmatpush3.msra.mxu0 %v4166_v25 }
 0x6f2   :  { %3362 = vmatprep.subr.mxu0 %v3970_v16 }
 0x6f3   :  { %3363 = vmatpush3.msra.mxu0 %v4170_v27 }
 0x6f4   :  { %3364 = vmatprep.subr.mxu0 %v3970_v16 }
 0x6f5   :  { %3365 = vmatpush3.msra.mxu0 %v4174_v28 }
 0x6f6   :  { %3380 = vmatprep.subr.mxu0 %v3970_v16 }
 0x7ae   :  { %v938_v49 = vpop.f32.mrf.mxu0 }
 0x7af   :  { %v942_v50 = vadd.f32 %v938_v49, %v625_v48 }
 0x7b0   :  { %v3346_v51 = vpop.f32.mrf.mxu0 }
 0x7b1   :  { %v3079_v52 = vmul.f32 -1.442695, %v942_v50 }
 0x7b3   :  { %3586 = vpow2.f32 %v3079_v52 }
 0x7b4   :  { %3588 = vtanh.f32 %v942_v50 }
 0x7c0   :  { %v3587_v53 = vpop.eup %3586 }
 0x7c1   :  { %v946_v54 = vadd.f32 1.0, %v3587_v53  ;;  %v3589_v56 = vpop.eup %3588 }
 0x7c3   :  { %3590 = vrcp.f32 %v946_v54 }
 0x7d0   :  { %v3591_v57 = vpop.eup %3590 }
 0x7d1   :  { %v950_v58 = vsel %vm4226_vm5, %v3589_v56, %v3591_v57 }
 0x7d2   :  { %951 = vrot.lane.b32.xlu0 %v950_v58, %s3972_s7  ;;  %v954_v61 = vmul.f32 %v950_v58, %v855_v42 }
 0x844   :  { %v952_v59 = vpop.permute.xlu0 %951 }
 0x845   :  { %v953_v60 = vmul.f32 %v952_v59, %v950_v58 }
 0x847   :  { %956 = vrot.lane.b32.xlu1 %v953_v60, %s3973_s22  ;;  %v1503_v60 = vld [vmem:[#allocation14 + $0x18] sm:$0xff] }
 0x8b9   :  { %v957_v62 = vpop.permute.xlu1 %956 }
 0x8ba   :  { %v959_v63 = vadd.f32 %v957_v62, %v954_v61 }
 0x8bc   :  { %3592 = vtanh.f32 %v959_v63 }
 0x8c9   :  { %v3593_v1 = vpop.eup %3592 }
 0x8ca   :  { %962 = vrot.lane.b32.xlu0 %v3593_v1, %s3972_s7 }
 0x93c   :  { %v963_v2 = vpop.permute.xlu0 %962 }
 0x93d   :  { %v965_v4 = vmul.f32 %v963_v2, %v950_v58  ;;  %v1502_v2 = vld [vmem:[#allocation14 + $0x10] sm:$0xff] }
 0x93f   :  { %967 = vrot.lane.b32.xlu1 %v965_v4, %s3973_s22  ;;  %v1492_v4 = vld [vmem:[#allocation3] sm:$0xff] }
 0x9b1   :  { %v968_v5 = vpop.permute.xlu1 %967 }
 0x9b2   :  { %971 = vst.msk [vmem:[#allocation3 + $0x10] sm:$0xff] %vm523_vm2, %v968_v5  ;;  %3356 = vmatmul.mubr.msk.f32.vlgmr.msra.gmra.mxu1 %vm523_vm2, %v968_v5  ;;  %v1501_v5 = vld [vmem:[#allocation14 + $0x8] sm:$0xff] }
 0x9b3   :  { %3370 = vmatpush3.msra.mxu1 %v4151_v13  ;;  %3377 = vmatprep.mubr.msk.f32.mxu1 %vm3971_vm1, %v3970_v16 }
 0x9b4   :  { %3371 = vmatprep.subr.mxu1 %v3970_v16 }
 0x9b5   :  { %3372 = vmatpush3.msra.mxu1 %v4166_v25 }
 0x9b6   :  { %3373 = vmatprep.subr.mxu1 %v3970_v16 }
 0x9b7   :  { %3374 = vmatpush3.msra.mxu1 %v4170_v27 }
 0x9b8   :  { %3375 = vmatprep.subr.mxu1 %v3970_v16 }
 0x9b9   :  { %3376 = vmatpush3.msra.mxu1 %v4174_v28 }
 0x9ba   :  { %3391 = vmatprep.subr.mxu1 %v3970_v16 }
 0xa72   :  { %v1042_v7 = vpop.f32.mrf.mxu1 }
 0xa73   :  { %v1046_v10 = vadd.f32 %v1042_v7, %v4219_v3  ;;  %v1500_v7 = vld [vmem:[#allocation14] sm:$0xff] }
 0xa74   :  { %v3357_v11 = vpop.f32.mrf.mxu1 }
 0xa75   :  { %v3081_v12 = vmul.f32 -1.442695, %v1046_v10  ;;  %v1494_v11 = vld [vmem:[#allocation3 + $0x10] sm:$0xff] }
 0xa77   :  { %3594 = vpow2.f32 %v3081_v12 }
 0xa78   :  { %3596 = vtanh.f32 %v1046_v10  ;;  %v1493_v10 = vld [vmem:[#allocation3 + $0x8] sm:$0xff] }
 0xa84   :  { %v3595_v15 = vpop.eup %3594 }
 0xa85   :  { %v1050_v17 = vadd.f32 1.0, %v3595_v15  ;;  %v3597_v18 = vpop.eup %3596 }
 0xa87   :  { %3598 = vrcp.f32 %v1050_v17 }
 0xa94   :  { %v3599_v19 = vpop.eup %3598 }
 0xa95   :  { %v1054_v20 = vsel %vm4226_vm5, %v3597_v18, %v3599_v19  ;;  %v645_v18 = vadd.f32 %v4213_v55, %v4272_v47 }
 0xa96   :  { %1055 = vrot.lane.b32.xlu0 %v1054_v20, %s3972_s7  ;;  %v1058_v23 = vmul.f32 %v1054_v20, %v959_v63 }
 0xb08   :  { %v1056_v21 = vpop.permute.xlu0 %1055 }
 0xb09   :  { %v1057_v22 = vmul.f32 %v1056_v21, %v1054_v20 }
 0xb0b   :  { %1060 = vrot.lane.b32.xlu1 %v1057_v22, %s3973_s22 }
 0xb7d   :  { %v1061_v3 = vpop.permute.xlu1 %1060 }
 0xb7e   :  { %v1063_v24 = vadd.f32 %v1061_v3, %v1058_v23 }
 0xb80   :  { %3600 = vtanh.f32 %v1063_v24 }
 0xb8d   :  { %v3601_v26 = vpop.eup %3600 }
 0xb8e   :  { %1066 = vrot.lane.b32.xlu0 %v3601_v26, %s3972_s7 }
 0xc00   :  { %v1067_v29 = vpop.permute.xlu0 %1066 }
 0xc01   :  { %v1069_v30 = vmul.f32 %v1067_v29, %v1054_v20 }
 0xc03   :  { %1071 = vrot.lane.b32.xlu1 %v1069_v30, %s3973_s22 }
 0xc75   :  { %v1072_v31 = vpop.permute.xlu1 %1071 }
 0xc76   :  { %1075 = vst.msk [vmem:[#allocation3 + $0x18] sm:$0xff] %vm523_vm2, %v1072_v31  ;;  %3367 = vmatmul.mubr.msk.f32.vlgmr.msra.gmra.mxu0 %vm523_vm2, %v1072_v31 }
 0xc77   :  { %3381 = vmatpush3.msra.mxu0 %v4151_v13  ;;  %3388 = vmatprep.mubr.msk.f32.mxu0 %vm3971_vm1, %v3970_v16 }
 0xc78   :  { %3382 = vmatprep.subr.mxu0 %v3970_v16 }
 0xc79   :  { %3383 = vmatpush3.msra.mxu0 %v4166_v25 }
 0xc7a   :  { %3384 = vmatprep.subr.mxu0 %v3970_v16 }
 0xc7b   :  { %3385 = vmatpush3.msra.mxu0 %v4170_v27 }
 0xc7c   :  { %3386 = vmatprep.subr.mxu0 %v3970_v16 }
 0xc7d   :  { %3387 = vmatpush3.msra.mxu0 %v4174_v28  ;;  %v1495_v12 = vld [vmem:[#allocation3 + $0x18] sm:$0xff] }
 0xc7e   :  { %3402 = vmatprep.subr.mxu0 %v1503_v60 }
 0xd36   :  { %v1146_v32 = vpop.f32.mrf.mxu0 }
 0xd37   :  { %v1150_v33 = vadd.f32 %v1146_v32, %v4231_v9 }
 0xd38   :  { %v3368_v34 = vpop.f32.mrf.mxu0 }
 0xd39   :  { %v3083_v35 = vmul.f32 -1.442695, %v1150_v33  ;;  %v4357_v34 = vld [vmem:[#allocation15 + $0x18] sm:$0xff] }
 0xd3b   :  { %3602 = vpow2.f32 %v3083_v35  ;;  %v4360_v35 = vld [vmem:[#allocation15 + $0x10] sm:$0xff] }
 0xd3c   :  { %3604 = vtanh.f32 %v1150_v33 }
 0xd48   :  { %v3603_v36 = vpop.eup %3602 }
 0xd49   :  { %v1154_v37 = vadd.f32 1.0, %v3603_v36  ;;  %v3605_v38 = vpop.eup %3604  ;;  %v4364_v36 = vld [vmem:[#allocation15 + $0x8] sm:$0xff] }
 0xd4b   :  { %3606 = vrcp.f32 %v1154_v37  ;;  %v4368_v37 = vld [vmem:[#allocation15] sm:$0xff] }
 0xd58   :  { %v3607_v39 = vpop.eup %3606 }
 0xd59   :  { %v1158_v40 = vsel %vm4226_vm5, %v3605_v38, %v3607_v39 }
 0xd5a   :  { %1159 = vrot.lane.b32.xlu0 %v1158_v40, %s3972_s7  ;;  %v1162_v43 = vmul.f32 %v1158_v40, %v1063_v24 }
 0xdcc   :  { %v1160_v41 = vpop.permute.xlu0 %1159 }
 0xdcd   :  { %v1161_v42 = vmul.f32 %v1160_v41, %v1158_v40 }
 0xdcf   :  { %1164 = vrot.lane.b32.xlu1 %v1161_v42, %s3973_s22 }
 0xe41   :  { %v1165_v9 = vpop.permute.xlu1 %1164 }
 0xe42   :  { %v1167_v44 = vadd.f32 %v1165_v9, %v1162_v43 }
 0xe44   :  { %3608 = vtanh.f32 %v1167_v44 }
 0xe51   :  { %v3609_v45 = vpop.eup %3608 }
 0xe52   :  { %1170 = vrot.lane.b32.xlu0 %v3609_v45, %s3972_s7 }
 0xec4   :  { %v1171_v46 = vpop.permute.xlu0 %1170 }
 0xec5   :  { %v1173_v48 = vmul.f32 %v1171_v46, %v1158_v40  ;;  %v4404_v46 = vld [vmem:[%s4678_s10] ss:$0 sm:$0xff] }
 0xec7   :  { %1175 = vrot.lane.b32.xlu1 %v1173_v48, %s3973_s22 }
 0xf39   :  { %v1176_v49 = vpop.permute.xlu1 %1175 }
 0xf3a   :  { %1179 = vst.msk [vmem:[#allocation3 + $0x20] sm:$0xff] %vm523_vm2, %v1176_v49  ;;  %3378 = vmatmul.mubr.msk.f32.vlgmr.msra.gmra.mxu1 %vm523_vm2, %v1176_v49 }
 0xf3b   :  { %3392 = vmatpush3.msra.mxu1 %v4151_v13  ;;  %3399 = vmatprep.mubr.msk.f32.mxu1 %vm3971_vm1, %v3970_v16 }
 0xf3c   :  { %3393 = vmatprep.subr.mxu1 %v3970_v16 }
 0xf3d   :  { %3394 = vmatpush3.msra.mxu1 %v4166_v25 }
 0xf3e   :  { %3395 = vmatprep.subr.mxu1 %v3970_v16 }
 0xf3f   :  { %3396 = vmatpush3.msra.mxu1 %v4170_v27 }
 0xf40   :  { %3397 = vmatprep.subr.mxu1 %v3970_v16 }
 0xf41   :  { %3398 = vmatpush3.msra.mxu1 %v4174_v28  ;;  %v1496_v15 = vld [vmem:[#allocation3 + $0x20] sm:$0xff] }
 0xf42   :  { %3422 = vmatprep.subr.mxu1 %v3970_v16 }
 0xffa   :  { %v1250_v50 = vpop.f32.mrf.mxu1 }
 0xffb   :  { %v1254_v13 = vadd.f32 %v1250_v50, %v4224_v6 }
 0xffc   :  { %v3379_v51 = vpop.f32.mrf.mxu1 }
 0xffd   :  { %v3085_v52 = vmul.f32 -1.442695, %v1254_v13 }
 0xfff   :  { %3610 = vpow2.f32 %v3085_v52 }
0x1000   :  { %3612 = vtanh.f32 %v1254_v13 }
0x100c   :  { %v3611_v53 = vpop.eup %3610 }
0x100d   :  { %v1258_v54 = vadd.f32 1.0, %v3611_v53  ;;  %v3613_v25 = vpop.eup %3612 }
0x100f   :  { %3614 = vrcp.f32 %v1258_v54 }
0x101c   :  { %v3615_v56 = vpop.eup %3614 }
0x101d   :  { %v1262_v27 = vsel %vm4226_vm5, %v3613_v25, %v3615_v56 }
0x101e   :  { %1263 = vrot.lane.b32.xlu0 %v1262_v27, %s3972_s7  ;;  %v1266_v58 = vmul.f32 %v1262_v27, %v1167_v44 }
0x1090   :  { %v1264_v28 = vpop.permute.xlu0 %1263 }
0x1091   :  { %v1265_v57 = vmul.f32 %v1264_v28, %v1262_v27 }
0x1093   :  { %1268 = vrot.lane.b32.xlu1 %v1265_v57, %s3973_s22 }
0x1105   :  { %v1269_v6 = vpop.permute.xlu1 %1268 }
0x1106   :  { %v1271_v59 = vadd.f32 %v1269_v6, %v1266_v58 }
0x1108   :  { %3616 = vtanh.f32 %v1271_v59 }
0x1115   :  { %v3617_v61 = vpop.eup %3616 }
0x1116   :  { %1274 = vrot.lane.b32.xlu0 %v3617_v61, %s3972_s7 }
0x1188   :  { %v1275_v62 = vpop.permute.xlu0 %1274 }
0x1189   :  { %v1277_v63 = vmul.f32 %v1275_v62, %v1262_v27 }
0x118b   :  { %1279 = vrot.lane.b32.xlu1 %v1277_v63, %s3973_s22 }
0x11fd   :  { %v1280_v1 = vpop.permute.xlu1 %1279 }
0x11fe   :  { %1283 = vst.msk [vmem:[#allocation3 + $0x28] sm:$0xff] %vm523_vm2, %v1280_v1  ;;  %3389 = vmatmul.mubr.msk.f32.vlgmr.msra.gmra.mxu0 %vm523_vm2, %v1280_v1 }
0x11ff   :  { %3403 = vmatpush3.msra.mxu0 %v1503_v60  ;;  %3410 = vmatprep.mubr.msk.f32.mxu0 %vm523_vm2, %v1492_v4 }
0x1200   :  { %3404 = vmatprep.subr.mxu0 %v1502_v2 }
0x1201   :  { %3405 = vmatpush3.msra.mxu0 %v1502_v2 }
0x1202   :  { %3406 = vmatprep.subr.mxu0 %v1501_v5 }
0x1203   :  { %3407 = vmatpush3.msra.mxu0 %v1501_v5 }
0x1204   :  { %3408 = vmatprep.subr.mxu0 %v1500_v7 }
0x1205   :  { %3409 = vmatpush3.msra.mxu0 %v1500_v7  ;;  %v1497_v17 = vld [vmem:[#allocation3 + $0x28] sm:$0xff] }
0x1206   :  { %3411 = vmatmul.mubr.msk.f32.vlgmr.msra.gmra.mxu0 %vm523_vm2, %v1493_v10  ;;  %3444 = vmatprep.subr.mxu0 %v3970_v16 }
0x1207   :  { %3413 = vmatprep.mubr.msk.f32.mxu0 %vm523_vm2, %v1494_v11  ;;  %3445 = vmatpush3.msra.mxu0 %v4357_v34 }
0x1208   :  { %3446 = vmatprep.subr.mxu0 %v3970_v16 }
0x1209   :  { %3447 = vmatpush3.msra.mxu0 %v4360_v35 }
0x120a   :  { %3414 = vmatmul.mubr.msk.f32.gmra.mxu0 %vm523_vm2, %v1495_v12  ;;  %3448 = vmatprep.subr.mxu0 %v3970_v16 }
0x120b   :  { %3416 = vmatprep.mubr.msk.f32.mxu0 %vm523_vm2, %v1496_v15  ;;  %3449 = vmatpush3.msra.mxu0 %v4364_v36 }
0x120c   :  { %3450 = vmatprep.subr.mxu0 %v3970_v16 }
0x120d   :  { %3451 = vmatpush3.msra.mxu0 %v4368_v37 }
0x120e   :  { %3417 = vmatmul.mubr.msk.f32.gmra.mxu0 %vm523_vm2, %v1497_v17  ;;  %3466 = vmatprep.subr.mxu0 %v3970_v16 }
0x12be   :  { %v1354_v19 = vpop.f32.mrf.mxu0 }
0x12bf   :  { %v1358_v20 = vadd.f32 %v1354_v19, %v645_v18 }
0x12c0   :  { %v3390_v21 = vpop.f32.mrf.mxu0 }
0x12c1   :  { %v3087_v22 = vmul.f32 -1.442695, %v1358_v20 }
0x12c3   :  { %3618 = vpow2.f32 %v3087_v22 }
0x12c4   :  { %3620 = vtanh.f32 %v1358_v20 }
0x12c6   :  { %v4398_v42 = vpop.f32.mrf.mxu0 }
0x12c7   :  { %v1611_v20 = vadd.f32 %v4398_v42, %v4404_v46 }
0x12c8   :  { %v1605_v45 = vpop.f32.mrf.mxu0 }
0x12c9   :  { %v1606_v48 = vadd.f32 %v4404_v46, %v1605_v45 }
0x12d0   :  { %v3619_v23 = vpop.eup %3618 }
0x12d1   :  { %v1362_v3 = vadd.f32 1.0, %v3619_v23  ;;  %v3621_v24 = vpop.eup %3620 }
0x12d3   :  { %3622 = vrcp.f32 %v1362_v3 }
0x12e0   :  { %v3623_v26 = vpop.eup %3622 }
0x12e1   :  { %v1366_v29 = vsel %vm4226_vm5, %v3621_v24, %v3623_v26 }
0x12e2   :  { %1367 = vrot.lane.b32.xlu0 %v1366_v29, %s3972_s7  ;;  %v1370_v55 = vmul.f32 %v1366_v29, %v1271_v59 }
0x1354   :  { %v1368_v30 = vpop.permute.xlu0 %1367 }
0x1355   :  { %v1369_v31 = vmul.f32 %v1368_v30, %v1366_v29 }
0x1357   :  { %1372 = vrot.lane.b32.xlu1 %v1369_v31, %s3973_s22 }
0x13c9   :  { %v1373_v47 = vpop.permute.xlu1 %1372 }
0x13ca   :  { %v4353_v32 = vadd.f32 %v1373_v47, %v1370_v55 }
0x13cc   :  { %3624 = vtanh.f32 %v4353_v32 }
0x13d9   :  { %v3625_v33 = vpop.eup %3624 }
0x13da   :  { %1378 = vrot.lane.b32.xlu0 %v3625_v33, %s3972_s7 }
0x144c   :  { %v1379_v38 = vpop.permute.xlu0 %1378 }
0x144d   :  { %v1381_v39 = vmul.f32 %v1379_v38, %v1366_v29 }
0x144f   :  { %1383 = vrot.lane.b32.xlu1 %v1381_v39, %s3973_s22 }
0x14c1   :  { %v1384_v40 = vpop.permute.xlu1 %1383 }
0x14c2   :  { %1387 = vst.msk [vmem:[#allocation3 + $0x30] sm:$0xff] %vm523_vm2, %v1384_v40  ;;  %3400 = vmatmul.mubr.msk.f32.vlgmr.msra.gmra.mxu1 %vm523_vm2, %v1384_v40 }
0x14c3   :  { %3423 = vmatpush3.msra.mxu1 %v4357_v34  ;;  %3430 = vmatprep.mubr.msk.f32.mxu1 %vm3971_vm1, %v3970_v16 }
0x14c4   :  { %3424 = vmatprep.subr.mxu1 %v3970_v16 }
0x14c5   :  { %3425 = vmatpush3.msra.mxu1 %v4360_v35 }
0x14c6   :  { %3426 = vmatprep.subr.mxu1 %v3970_v16 }
0x14c7   :  { %3427 = vmatpush3.msra.mxu1 %v4364_v36 }
0x14c8   :  { %3428 = vmatprep.subr.mxu1 %v3970_v16 }
0x14c9   :  { %3429 = vmatpush3.msra.mxu1 %v4368_v37  ;;  %v1498_v41 = vld [vmem:[#allocation3 + $0x30] sm:$0xff] }
0x14ca   :  { %3431 = vmatmul.mubr.f32.vlgmr.msra.gmra.mxu1 %v3970_v16  ;;  %3419 = vmatprep.mubr.msk.f32.mxu0 %vm523_vm2, %v1498_v41 }
0x14cb   :  { %3433 = vmatprep.subr.mxu1 %v3970_v16  ;;  %3441 = vmatprep.mubr.msk.f32.mxu1 %vm3971_vm1, %v3970_v16 }
0x14cc   :  { %3434 = vmatpush3.msra.mxu1 %v4357_v34 }
0x14cd   :  { %3435 = vmatprep.subr.mxu1 %v3970_v16 }
0x14ce   :  { %3436 = vmatpush3.msra.mxu1 %v4360_v35 }
0x14cf   :  { %3437 = vmatprep.subr.mxu1 %v3970_v16 }
0x14d0   :  { %3438 = vmatpush3.msra.mxu1 %v4364_v36 }
0x14d1   :  { %3439 = vmatprep.subr.mxu1 %v3970_v16 }
0x14d2   :  { %3440 = vmatpush3.msra.mxu1 %v4368_v37 }
0x14d3   :  { %3455 = vmatprep.subr.mxu1 %v3970_v16 }
0x1582   :  { %v1458_v43 = vpop.f32.mrf.mxu1 }
0x1583   :  { %v1462_v9 = vadd.f32 %v1458_v43, %v4234_v14 }
0x1584   :  { %v3401_v44 = vpop.f32.mrf.mxu1 }
0x1585   :  { %v3089_v28 = vmul.f32 -1.442695, %v1462_v9  ;;  %v3415_v44 = vpop.f32.mrf.mxu0 }
0x1587   :  { %v1615_v45 = vpop.f32.mrf.mxu0 }
0x158a   :  { %v1719_v49 = vpop.f32.mrf.mxu1 }
0x158b   :  { %v1723_v50 = vadd.f32 %v1719_v49, %v1606_v48  ;;  %v4457_v48 = vpop.f32.mrf.mxu0 }
0x158c   :  { %v3432_v13 = vpop.f32.mrf.mxu1 }
0x158d   :  { %v3099_v51 = vmul.f32 -1.442695, %v1723_v50  ;;  %v4459_v49 = vpop.f32.mrf.mxu0 }
0x158f   :  { %3626 = vpow2.f32 %v3099_v51  ;;  %v1616_v51 = vadd.f32 %v4404_v46, %v1615_v45 }
0x1590   :  { %3628 = vtanh.f32 %v1723_v50 }
0x159c   :  { %v3627_v52 = vpop.eup %3626 }
0x159d   :  { %v1727_v53 = vadd.f32 1.0, %v3627_v52  ;;  %v3629_v54 = vpop.eup %3628 }
0x159f   :  { %3630 = vrcp.f32 %v1727_v53 }
0x15a0   :  { %3632 = vpow2.f32 %v3089_v28 }
0x15ac   :  { %v3631_v14 = vpop.eup %3630 }
0x15ad   :  { %v1731_v25 = vsel %vm4226_vm5, %v3629_v54, %v3631_v14  ;;  %v3633_v57 = vpop.eup %3632 }
0x15ae   :  { %1732 = vrot.lane.b32.xlu0 %v1731_v25, %s3972_s7  ;;  %v1735_v58 = vmul.f32 0.0, %v1731_v25  ;;  %v1466_v6 = vadd.f32 1.0, %v3633_v57 }
0x1620   :  { %v1733_v56 = vpop.permute.xlu0 %1732 }
0x1621   :  { %v1734_v27 = vmul.f32 %v1733_v56, %v1731_v25 }
0x1623   :  { %1737 = vrot.lane.b32.xlu1 %v1734_v27, %s3973_s22 }
0x1695   :  { %v1738_v59 = vpop.permute.xlu1 %1737 }
0x1696   :  { %v1740_v60 = vadd.f32 %v1738_v59, %v1735_v58 }
0x1698   :  { %3634 = vtanh.f32 %v1740_v60 }
0x1699   :  { %3636 = vrcp.f32 %v1466_v6 }
0x169a   :  { %3638 = vtanh.f32 %v1462_v9 }
0x16a5   :  { %v3635_v61 = vpop.eup %3634 }
0x16a6   :  { %v3637_v62 = vpop.eup %3636  ;;  %1743 = vrot.lane.b32.xlu0 %v3635_v61, %s3972_s7 }
0x16a7   :  { %v3639_v63 = vpop.eup %3638 }
0x16a8   :  { %v1470_v1 = vsel %vm4226_vm5, %v3639_v63, %v3637_v62 }
0x16a9   :  { %v1474_v11 = vmul.f32 %v1470_v1, %v4353_v32 }
0x16aa   :  { %1471 = vrot.lane.b32.xlu0 %v1470_v1, %s3972_s7 }
0x1718   :  { %v1744_v2 = vpop.permute.xlu0 %1743 }
0x1719   :  { %v4415_v4 = vmul.f32 %v1744_v2, %v1731_v25 }
0x171b   :  { %1750 = vrot.lane.b32.xlu1 %v4415_v4, %s3973_s22 }
0x171c   :  { %v1472_v5 = vpop.permute.xlu0 %1471 }
0x171d   :  { %v1473_v7 = vmul.f32 %v1472_v5, %v1470_v1 }
0x171f   :  { %1476 = vrot.lane.b32.xlu0 %v1473_v7, %s3973_s22 }
0x178d   :  { %v1751_v10 = vpop.permute.xlu1 %1750 }
0x178e   :  { %3442 = vmatmul.mubr.msk.f32.vlgmr.msra.gmra.mxu1 %vm523_vm2, %v1751_v10 }
0x178f   :  { %3456 = vmatpush3.msra.mxu1 %v4357_v34  ;;  %3463 = vmatprep.mubr.msk.f32.mxu1 %vm3971_vm1, %v3970_v16 }
0x1790   :  { %3457 = vmatprep.subr.mxu1 %v3970_v16 }
0x1791   :  { %v1477_v12 = vpop.permute.xlu0 %1476  ;;  %3458 = vmatpush3.msra.mxu1 %v4360_v35 }
0x1792   :  { %v1479_v15 = vadd.f32 %v1477_v12, %v1474_v11  ;;  %3459 = vmatprep.subr.mxu1 %v3970_v16 }
0x1793   :  { %3460 = vmatpush3.msra.mxu1 %v4364_v36 }
0x1794   :  { %3640 = vtanh.f32 %v1479_v15  ;;  %3461 = vmatprep.subr.mxu1 %v3970_v16 }
0x1795   :  { %3462 = vmatpush3.msra.mxu1 %v4368_v37 }
0x1796   :  { %3477 = vmatprep.subr.mxu1 %v3970_v16 }
0x17a1   :  { %v3641_v17 = vpop.eup %3640 }
0x17a2   :  { %1482 = vrot.lane.b32.xlu0 %v3641_v17, %s3972_s7 }
0x1814   :  { %v1483_v18 = vpop.permute.xlu0 %1482 }
0x1815   :  { %v1485_v19 = vmul.f32 %v1483_v18, %v1470_v1 }
0x1817   :  { %1487 = vrot.lane.b32.xlu0 %v1485_v19, %s3973_s22 }
0x184e   :  { %v1820_v21 = vpop.f32.mrf.mxu1 }
0x184f   :  { %v1824_v22 = vadd.f32 %v1820_v21, %v1611_v20 }
0x1850   :  { %v3443_v23 = vpop.f32.mrf.mxu1 }
0x1851   :  { %v3101_v3 = vmul.f32 -1.442695, %v1824_v22 }
0x1853   :  { %3642 = vpow2.f32 %v3101_v3 }
0x1854   :  { %3644 = vtanh.f32 %v1824_v22 }
0x1860   :  { %v3643_v24 = vpop.eup %3642 }
0x1861   :  { %v1828_v26 = vadd.f32 1.0, %v3643_v24  ;;  %v3645_v29 = vpop.eup %3644 }
0x1863   :  { %3646 = vrcp.f32 %v1828_v26 }
0x1870   :  { %v3647_v30 = vpop.eup %3646 }
0x1871   :  { %v1832_v31 = vsel %vm4226_vm5, %v3645_v29, %v3647_v30 }
0x1872   :  { %1833 = vrot.lane.b32.xlu1 %v1832_v31, %s3972_s7  ;;  %v1836_v38 = vmul.f32 %v1832_v31, %v1740_v60 }
0x1889   :  { %v1488_v55 = vpop.permute.xlu0 %1487 }
0x188a   :  { %1491 = vst.msk [vmem:[#allocation3 + $0x38] sm:$0xff] %vm523_vm2, %v1488_v55 }
0x1891   :  { %v1499_v47 = vld [vmem:[#allocation3 + $0x38] sm:$0xff] }
0x1892   :  { %3420 = vmatmul.mubr.msk.f32.gmra.mxu0 %vm523_vm2, %v1499_v47 }
0x1893   :  { %3452 = vmatprep.mubr.msk.f32.mxu0 %vm3971_vm1, %v3970_v16 }
0x18e4   :  { %v1834_v32 = vpop.permute.xlu1 %1833 }
0x18e5   :  { %v1835_v33 = vmul.f32 %v1834_v32, %v1832_v31  ;;  %v1626_v32 = vadd.f32 %v4404_v46, %v4459_v49 }
0x18e7   :  { %1838 = vrot.lane.b32.xlu1 %v1835_v33, %s3973_s22 }
0x1952   :  { %v4461_v50 = vpop.f32.mrf.mxu0 }
0x1954   :  { %v4463_v13 = vpop.f32.mrf.mxu0 }
0x1959   :  { %v1839_v39 = vpop.permute.xlu1 %1838 }
0x195a   :  { %v1841_v40 = vadd.f32 %v1839_v39, %v1836_v38 }
0x195c   :  { %3648 = vtanh.f32 %v1841_v40 }
0x1969   :  { %v3649_v41 = vpop.eup %3648 }
0x196a   :  { %1844 = vrot.lane.b32.xlu1 %v3649_v41, %s3972_s7 }
0x19dc   :  { %v1845_v42 = vpop.permute.xlu1 %1844 }
0x19dd   :  { %v1847_v43 = vmul.f32 %v1845_v42, %v1832_v31 }
0x19df   :  { %1851 = vrot.lane.b32.xlu1 %v1847_v43, %s3973_s22  ;;  %v1848_v1 = vadd.f32 %v1847_v43, %v4415_v4  ;;  %v1621_v4 = vadd.f32 %v3415_v44, %v4404_v46 }
0x1a51   :  { %v1852_v9 = vpop.permute.xlu1 %1851 }
0x1a52   :  { %3453 = vmatmul.mubr.msk.f32.vlgmr.msra.gmra.mxu0 %vm523_vm2, %v1852_v9 }
0x1a53   :  { %3467 = vmatpush3.msra.mxu0 %v4357_v34  ;;  %3474 = vmatprep.mubr.msk.f32.mxu0 %vm3971_vm1, %v3970_v16 }
0x1a54   :  { %3468 = vmatprep.subr.mxu0 %v3970_v16 }
0x1a55   :  { %3469 = vmatpush3.msra.mxu0 %v4360_v35 }
0x1a56   :  { %3470 = vmatprep.subr.mxu0 %v3970_v16 }
0x1a57   :  { %3471 = vmatpush3.msra.mxu0 %v4364_v36 }
0x1a58   :  { %3472 = vmatprep.subr.mxu0 %v3970_v16 }
0x1a59   :  { %3473 = vmatpush3.msra.mxu0 %v4368_v37 }
0x1a5a   :  { %3488 = vmatprep.subr.mxu0 %v3970_v16 }
0x1b12   :  { %v1921_v52 = vpop.f32.mrf.mxu0 }
0x1b13   :  { %v1925_v53 = vadd.f32 %v1921_v52, %v1616_v51 }
0x1b14   :  { %v3454_v54 = vpop.f32.mrf.mxu0 }
0x1b15   :  { %v3103_v14 = vmul.f32 -1.442695, %v1925_v53 }
0x1b17   :  { %3650 = vpow2.f32 %v3103_v14 }
0x1b18   :  { %3652 = vtanh.f32 %v1925_v53 }
0x1b24   :  { %v3651_v25 = vpop.eup %3650 }
0x1b25   :  { %v1929_v56 = vadd.f32 1.0, %v3651_v25  ;;  %v3653_v27 = vpop.eup %3652 }
0x1b27   :  { %3654 = vrcp.f32 %v1929_v56 }
0x1b34   :  { %v3655_v28 = vpop.eup %3654 }
0x1b35   :  { %v1933_v57 = vsel %vm4226_vm5, %v3653_v27, %v3655_v28 }
0x1b36   :  { %1934 = vrot.lane.b32.xlu0 %v1933_v57, %s3972_s7  ;;  %v1937_v59 = vmul.f32 %v1933_v57, %v1841_v40 }
0x1ba8   :  { %v1935_v58 = vpop.permute.xlu0 %1934 }
0x1ba9   :  { %v1936_v6 = vmul.f32 %v1935_v58, %v1933_v57 }
0x1bab   :  { %1939 = vrot.lane.b32.xlu1 %v1936_v6, %s3973_s22 }
0x1c1d   :  { %v1940_v60 = vpop.permute.xlu1 %1939 }
0x1c1e   :  { %v1942_v61 = vadd.f32 %v1940_v60, %v1937_v59 }
0x1c20   :  { %3656 = vtanh.f32 %v1942_v61 }
0x1c2d   :  { %v3657_v62 = vpop.eup %3656 }
0x1c2e   :  { %1945 = vrot.lane.b32.xlu0 %v3657_v62, %s3972_s7 }
0x1ca0   :  { %v1946_v63 = vpop.permute.xlu0 %1945 }
0x1ca1   :  { %v1948_v2 = vmul.f32 %v1946_v63, %v1933_v57 }
0x1ca3   :  { %v1949_v5 = vadd.f32 %v1948_v2, %v1848_v1  ;;  %1952 = vrot.lane.b32.xlu1 %v1948_v2, %s3973_s22 }
0x1d15   :  { %v1953_v7 = vpop.permute.xlu1 %1952 }
0x1d16   :  { %3464 = vmatmul.mubr.msk.f32.vlgmr.msra.gmra.mxu1 %vm523_vm2, %v1953_v7 }
0x1d17   :  { %3478 = vmatpush3.msra.mxu1 %v4357_v34  ;;  %3485 = vmatprep.mubr.msk.f32.mxu1 %vm3971_vm1, %v3970_v16 }
0x1d18   :  { %3479 = vmatprep.subr.mxu1 %v3970_v16 }
0x1d19   :  { %3480 = vmatpush3.msra.mxu1 %v4360_v35 }
0x1d1a   :  { %3481 = vmatprep.subr.mxu1 %v3970_v16 }
0x1d1b   :  { %3482 = vmatpush3.msra.mxu1 %v4364_v36 }
0x1d1c   :  { %3483 = vmatprep.subr.mxu1 %v3970_v16 }
0x1d1d   :  { %3484 = vmatpush3.msra.mxu1 %v4368_v37 }
0x1d1e   :  { %3499 = vmatprep.subr.mxu1 %v3970_v16 }
0x1dd6   :  { %v2022_v10 = vpop.f32.mrf.mxu1 }
0x1dd7   :  { %v2026_v11 = vadd.f32 %v2022_v10, %v1621_v4 }
0x1dd8   :  { %v3465_v12 = vpop.f32.mrf.mxu1 }
0x1dd9   :  { %v3105_v15 = vmul.f32 -1.442695, %v2026_v11 }
0x1ddb   :  { %3658 = vpow2.f32 %v3105_v15 }
0x1ddc   :  { %3660 = vtanh.f32 %v2026_v11  ;;  %v1636_v11 = vadd.f32 %v4404_v46, %v4463_v13 }
0x1de8   :  { %v3659_v17 = vpop.eup %3658 }
0x1de9   :  { %v2030_v18 = vadd.f32 1.0, %v3659_v17  ;;  %v3661_v19 = vpop.eup %3660 }
0x1deb   :  { %3662 = vrcp.f32 %v2030_v18 }
0x1df8   :  { %v3663_v20 = vpop.eup %3662 }
0x1df9   :  { %v2034_v21 = vsel %vm4226_vm5, %v3661_v19, %v3663_v20 }
0x1dfa   :  { %2035 = vrot.lane.b32.xlu0 %v2034_v21, %s3972_s7  ;;  %v2038_v3 = vmul.f32 %v2034_v21, %v1942_v61 }
0x1e6c   :  { %v2036_v22 = vpop.permute.xlu0 %2035 }
0x1e6d   :  { %v2037_v23 = vmul.f32 %v2036_v22, %v2034_v21 }
0x1e6f   :  { %2040 = vrot.lane.b32.xlu1 %v2037_v23, %s3973_s22 }
0x1ee1   :  { %v2041_v24 = vpop.permute.xlu1 %2040 }
0x1ee2   :  { %v2043_v26 = vadd.f32 %v2041_v24, %v2038_v3 }
0x1ee4   :  { %3664 = vtanh.f32 %v2043_v26 }
0x1ef1   :  { %v3665_v29 = vpop.eup %3664 }
0x1ef2   :  { %2046 = vrot.lane.b32.xlu0 %v3665_v29, %s3972_s7 }
0x1f64   :  { %v2047_v30 = vpop.permute.xlu0 %2046 }
0x1f65   :  { %v2049_v31 = vmul.f32 %v2047_v30, %v2034_v21 }
0x1f67   :  { %v2050_v55 = vadd.f32 %v2049_v31, %v1949_v5  ;;  %2053 = vrot.lane.b32.xlu1 %v2049_v31, %s3973_s22 }
0x1fd9   :  { %v2054_v47 = vpop.permute.xlu1 %2053 }
0x1fda   :  { %3475 = vmatmul.mubr.msk.f32.vlgmr.msra.gmra.mxu0 %vm523_vm2, %v2054_v47 }
0x1fdb   :  { %3489 = vmatpush3.msra.mxu0 %v4357_v34  ;;  %3496 = vmatprep.mubr.msk.f32.mxu0 %vm3971_vm1, %v3970_v16 }
0x1fdc   :  { %3490 = vmatprep.subr.mxu0 %v3970_v16 }
0x1fdd   :  { %3491 = vmatpush3.msra.mxu0 %v4360_v35 }
0x1fde   :  { %3492 = vmatprep.subr.mxu0 %v3970_v16 }
0x1fdf   :  { %3493 = vmatpush3.msra.mxu0 %v4364_v36 }
0x1fe0   :  { %3494 = vmatprep.subr.mxu0 %v3970_v16 }
0x1fe1   :  { %3495 = vmatpush3.msra.mxu0 %v4368_v37 }
0x1fe2   :  { %3510 = vmatprep.subr.mxu0 %v3970_v16 }
0x209a   :  { %v2123_v33 = vpop.f32.mrf.mxu0 }
0x209b   :  { %v2127_v38 = vadd.f32 %v2123_v33, %v1626_v32  ;;  %v1641_v33 = vadd.f32 %v4461_v50, %v4404_v46 }
0x209c   :  { %v3476_v39 = vpop.f32.mrf.mxu0 }
0x209d   :  { %v3107_v40 = vmul.f32 -1.442695, %v2127_v38 }
0x209f   :  { %3666 = vpow2.f32 %v3107_v40 }
0x20a0   :  { %3668 = vtanh.f32 %v2127_v38 }
0x20ac   :  { %v3667_v41 = vpop.eup %3666 }
0x20ad   :  { %v2131_v42 = vadd.f32 1.0, %v3667_v41  ;;  %v3669_v43 = vpop.eup %3668 }
0x20af   :  { %3670 = vrcp.f32 %v2131_v42 }
0x20bc   :  { %v3671_v9 = vpop.eup %3670 }
0x20bd   :  { %v2135_v44 = vsel %vm4226_vm5, %v3669_v43, %v3671_v9 }
0x20be   :  { %2136 = vrot.lane.b32.xlu0 %v2135_v44, %s3972_s7  ;;  %v2139_v49 = vmul.f32 %v2135_v44, %v2043_v26 }
0x2130   :  { %v2137_v45 = vpop.permute.xlu0 %2136 }
0x2131   :  { %v2138_v51 = vmul.f32 %v2137_v45, %v2135_v44 }
0x2133   :  { %2141 = vrot.lane.b32.xlu1 %v2138_v51, %s3973_s22 }
0x21a5   :  { %v2142_v52 = vpop.permute.xlu1 %2141 }
0x21a6   :  { %v2144_v53 = vadd.f32 %v2142_v52, %v2139_v49 }
0x21a8   :  { %3672 = vtanh.f32 %v2144_v53 }
0x21b5   :  { %v3673_v54 = vpop.eup %3672 }
0x21b6   :  { %2147 = vrot.lane.b32.xlu0 %v3673_v54, %s3972_s7 }
0x2228   :  { %v2148_v14 = vpop.permute.xlu0 %2147 }
0x2229   :  { %v2150_v25 = vmul.f32 %v2148_v14, %v2135_v44 }
0x222b   :  { %v2151_v56 = vadd.f32 %v2150_v25, %v2050_v55  ;;  %2154 = vrot.lane.b32.xlu1 %v2150_v25, %s3973_s22  ;;  %v2541_v25 = vld [vmem:[#allocation18 + $0x18] sm:$0xff] }
0x229d   :  { %v2155_v27 = vpop.permute.xlu1 %2154 }
0x229e   :  { %3486 = vmatmul.mubr.msk.f32.vlgmr.msra.gmra.mxu1 %vm523_vm2, %v2155_v27  ;;  %v2539_v27 = vld [vmem:[#allocation18 + $0x8] sm:$0xff] }
0x229f   :  { %3500 = vmatpush3.msra.mxu1 %v4357_v34  ;;  %3507 = vmatprep.mubr.msk.f32.mxu1 %vm3971_vm1, %v3970_v16  ;;  %v1631_v34 = vadd.f32 %v4457_v48, %v4404_v46 }
0x22a0   :  { %3501 = vmatprep.subr.mxu1 %v3970_v16 }
0x22a1   :  { %3502 = vmatpush3.msra.mxu1 %v4360_v35 }
0x22a2   :  { %3503 = vmatprep.subr.mxu1 %v3970_v16 }
0x22a3   :  { %3504 = vmatpush3.msra.mxu1 %v4364_v36 }
0x22a4   :  { %3505 = vmatprep.subr.mxu1 %v3970_v16 }
0x22a5   :  { %3506 = vmatpush3.msra.mxu1 %v4368_v37 }
0x22a6   :  { %3515 = vmatprep.subr.mxu1 %v3970_v16 }
0x235e   :  { %v2224_v28 = vpop.f32.mrf.mxu1 }
0x235f   :  { %v2228_v57 = vadd.f32 %v2224_v28, %v1631_v34  ;;  %v2455_v34 = vld [vmem:[%s4672_s4] sm:$0xff] }
0x2360   :  { %v3487_v58 = vpop.f32.mrf.mxu1 }
0x2361   :  { %v3109_v6 = vmul.f32 -1.442695, %v2228_v57  ;;  %v2536_v58 = vld [vmem:[#allocation17 + $0x10] sm:$0xff] }
0x2363   :  { %3674 = vpow2.f32 %v3109_v6  ;;  %v2535_v6 = vld [vmem:[#allocation17 + $0x8] sm:$0xff] }
0x2364   :  { %3676 = vtanh.f32 %v2228_v57  ;;  %v2537_v57 = vld [vmem:[#allocation17 + $0x18] sm:$0xff] }
0x2370   :  { %v3675_v59 = vpop.eup %3674 }
0x2371   :  { %v2232_v35 = vadd.f32 1.0, %v3675_v59  ;;  %v3677_v60 = vpop.eup %3676  ;;  %v2534_v59 = vld [vmem:[#allocation17] sm:$0xff] }
0x2373   :  { %3678 = vrcp.f32 %v2232_v35  ;;  %v2538_v35 = vld [vmem:[#allocation18] sm:$0xff] }
0x2380   :  { %v3679_v36 = vpop.eup %3678 }
0x2381   :  { %v2236_v61 = vsel %vm4226_vm5, %v3677_v60, %v3679_v36 }
0x2382   :  { %2237 = vrot.lane.b32.xlu0 %v2236_v61, %s3972_s7  ;;  %v2240_v48 = vmul.f32 %v2236_v61, %v2144_v53 }
0x23f4   :  { %v2238_v37 = vpop.permute.xlu0 %2237 }
0x23f5   :  { %v2239_v62 = vmul.f32 %v2238_v37, %v2236_v61 }
0x23f7   :  { %2242 = vrot.lane.b32.xlu1 %v2239_v62, %s3973_s22  ;;  %v2703_v62 = vld [vmem:[#allocation20 + $0x18] sm:$0xff] }
0x2469   :  { %v2243_v63 = vpop.permute.xlu1 %2242 }
0x246a   :  { %v2245_v1 = vadd.f32 %v2243_v63, %v2240_v48  ;;  %v2702_v48 = vld [vmem:[#allocation20 + $0x10] sm:$0xff]  ;;  %v2701_v63 = vld [vmem:[#allocation20 + $0x8] sm:$0xff] }
0x246c   :  { %3680 = vtanh.f32 %v2245_v1 }
0x2479   :  { %v3681_v2 = vpop.eup %3680 }
0x247a   :  { %2248 = vrot.lane.b32.xlu0 %v3681_v2, %s3972_s7  ;;  %v2793_v2 = vld [vmem:[#allocation21 + $0x38] sm:$0xff] }
0x24ec   :  { %v2249_v5 = vpop.permute.xlu0 %2248 }
0x24ed   :  { %v2251_v7 = vmul.f32 %v2249_v5, %v2236_v61 }
0x24ef   :  { %v2252_v4 = vadd.f32 %v2251_v7, %v2151_v56  ;;  %2255 = vrot.lane.b32.xlu1 %v2251_v7, %s3973_s22  ;;  %v2540_v56 = vld [vmem:[#allocation18 + $0x10] sm:$0xff]  ;;  %v3117_v7 = vld [vmem:[%s4681_s13] ss:$0 sm:$0xff] }
0x2561   :  { %v2256_v10 = vpop.permute.xlu1 %2255 }
0x2562   :  { %3497 = vmatmul.mubr.msk.f32.vlgmr.msra.gmra.mxu0 %vm523_vm2, %v2256_v10 }
0x2563   :  { %3512 = vmatprep.mubr.msk.f32.mxu0 %vm3971_vm1, %v3970_v16 }
0x2622   :  { %v2325_v12 = vpop.f32.mrf.mxu0 }
0x2623   :  { %v2329_v15 = vadd.f32 %v2325_v12, %v1636_v11 }
0x2624   :  { %v3498_v17 = vpop.f32.mrf.mxu0 }
0x2625   :  { %v3111_v18 = vmul.f32 -1.442695, %v2329_v15 }
0x2627   :  { %3682 = vpow2.f32 %v3111_v18 }
0x2628   :  { %3684 = vtanh.f32 %v2329_v15 }
0x2634   :  { %v3683_v19 = vpop.eup %3682 }
0x2635   :  { %v2333_v20 = vadd.f32 1.0, %v3683_v19  ;;  %v3685_v21 = vpop.eup %3684 }
0x2637   :  { %3686 = vrcp.f32 %v2333_v20  ;;  %v2791_v20 = vld [vmem:[#allocation21 + $0x28] sm:$0xff] }
0x2644   :  { %v3687_v22 = vpop.eup %3686 }
0x2645   :  { %v2337_v23 = vsel %vm4226_vm5, %v3685_v21, %v3687_v22  ;;  %v2790_v21 = vld [vmem:[#allocation21 + $0x20] sm:$0xff]  ;;  %v2789_v22 = vld [vmem:[#allocation21 + $0x18] sm:$0xff] }
0x2646   :  { %2338 = vrot.lane.b32.xlu0 %v2337_v23, %s3972_s7  ;;  %v2341_v13 = vmul.f32 %v2337_v23, %v2245_v1  ;;  %v2700_v1 = vld [vmem:[#allocation20] sm:$0xff] }
0x26b8   :  { %v2339_v3 = vpop.permute.xlu0 %2338 }
0x26b9   :  { %v2340_v24 = vmul.f32 %v2339_v3, %v2337_v23  ;;  %v2787_v3 = vld [vmem:[#allocation21 + $0x8] sm:$0xff] }
0x26bb   :  { %2343 = vrot.lane.b32.xlu1 %v2340_v24, %s3973_s22  ;;  %v2786_v24 = vld [vmem:[#allocation21] sm:$0xff] }
0x272d   :  { %v2344_v26 = vpop.permute.xlu1 %2343 }
0x272e   :  { %v2346_v29 = vadd.f32 %v2344_v26, %v2341_v13  ;;  %v3118_v13 = vld [vmem:[%s4683_s15] ss:$0 sm:$0xff] }
0x2730   :  { %3688 = vtanh.f32 %v2346_v29 }
0x273d   :  { %v3689_v30 = vpop.eup %3688 }
0x273e   :  { %2349 = vrot.lane.b32.xlu0 %v3689_v30, %s3972_s7 }
0x27b0   :  { %v2350_v31 = vpop.permute.xlu0 %2349 }
0x27b1   :  { %v2352_v55 = vmul.f32 %v2350_v31, %v2337_v23  ;;  %v2788_v23 = vld [vmem:[#allocation21 + $0x10] sm:$0xff] }
0x27b3   :  { %v2353_v47 = vadd.f32 %v2352_v55, %v2252_v4  ;;  %2356 = vrot.lane.b32.xlu1 %v2352_v55, %s3973_s22 }
0x2825   :  { %v2357_v32 = vpop.permute.xlu1 %2356 }
0x2826   :  { %3508 = vmatmul.mubr.msk.f32.vlgmr.msra.gmra.mxu1 %vm523_vm2, %v2357_v32 }
0x2827   :  { %3523 = vmatprep.mubr.msk.f32.mxu1 %vm3971_vm1, %v3970_v16  ;;  %3516 = vmatpush3.msra.mxu1 %v2541_v25 }
0x2828   :  { %3517 = vmatprep.subr.mxu1 %v3970_v16 }
0x2829   :  { %3518 = vmatpush3.msra.mxu1 %v2540_v56 }
0x282a   :  { %3519 = vmatprep.subr.mxu1 %v3970_v16 }
0x282b   :  { %3520 = vmatpush3.msra.mxu1 %v2539_v27 }
0x282c   :  { %3521 = vmatprep.subr.mxu1 %v3970_v16 }
0x282d   :  { %3522 = vmatpush3.msra.mxu1 %v2538_v35 }
0x282e   :  { %3537 = vmatprep.subr.mxu1 %v3970_v16 }
0x28e6   :  { %v2426_v38 = vpop.f32.mrf.mxu1 }
0x28e7   :  { %v2430_v39 = vadd.f32 %v2426_v38, %v1641_v33  ;;  %v2794_v33 = vld [vmem:[%s4685_s17] sm:$0x3] }
0x28e8   :  { %v3509_v40 = vpop.f32.mrf.mxu1 }
0x28e9   :  { %v3113_v41 = vmul.f32 -1.442695, %v2430_v39 }
0x28eb   :  { %3690 = vpow2.f32 %v3113_v41 }
0x28ec   :  { %3692 = vtanh.f32 %v2430_v39 }
0x28f8   :  { %v3691_v42 = vpop.eup %3690 }
0x28f9   :  { %v2434_v43 = vadd.f32 1.0, %v3691_v42  ;;  %v3693_v9 = vpop.eup %3692 }
0x28fb   :  { %3694 = vrcp.f32 %v2434_v43 }
0x2908   :  { %v3695_v44 = vpop.eup %3694 }
0x2909   :  { %v2438_v45 = vsel %vm4226_vm5, %v3693_v9, %v3695_v44  ;;  %v3974_v44 = vmov 0  }
0x290a   :  { %2439 = vrot.lane.b32.xlu0 %v2438_v45, %s3972_s7  ;;  %v2442_v46 = vmul.f32 %v2438_v45, %v2346_v29 }
0x297c   :  { %v2440_v51 = vpop.permute.xlu0 %2439 }
0x297d   :  { %v2441_v49 = vmul.f32 %v2440_v51, %v2438_v45 }
0x297f   :  { %2444 = vrot.lane.b32.xlu1 %v2441_v49, %s3973_s22 }
0x29f1   :  { %v2445_v50 = vpop.permute.xlu1 %2444 }
0x29f2   :  { %v2447_v52 = vadd.f32 %v2445_v50, %v2442_v46 }
0x29f4   :  { %3696 = vtanh.f32 %v2447_v52 }
0x2a01   :  { %v3697_v53 = vpop.eup %3696 }
0x2a02   :  { %2450 = vrot.lane.b32.xlu0 %v3697_v53, %s3972_s7 }
0x2a74   :  { %v2451_v54 = vpop.permute.xlu0 %2450 }
0x2a75   :  { %v2453_v14 = vmul.f32 %v2451_v54, %v2438_v45 }
0x2a77   :  { %v2454_v8 = vadd.f32 %v2453_v14, %v2353_v47  ;;  %v2797_v47 = vshrl.u32 %v503_v0, 7 }
0x2a79   :  { %2457 = vrot.lane.b32.xlu1 %v2454_v8, %s3973_s22  ;;  %v2798_v32 = vsub.s32 0, %v2797_v47  ;;  %v2802_v38 = vsub.s32 1, %v2797_v47 }
0x2a7b   :  { %v2799_v39 = vrot.slane %v2794_v33, %v2798_v32  ;;  %v2803_v40 = vrot.slane %v2794_v33, %v2802_v38 }
0x2aeb   :  { %v2458_v28 = vpop.permute.xlu1 %2457 }
0x2aec   :  { %3511 = vmatpush3.msra.mxu0 %v2458_v28 }
0x2aed   :  { %3513 = vmatmul.mubr.msk.f32.vlgmr.msra.gmra.mxu0 %vm2460_vm6, %v2455_v34  ;;  %3526 = vmatprep.subr.mxu0 %v3970_v16 }
0x2aee   :  { %3527 = vmatpush3.msra.mxu0 %v2537_v57  ;;  %3534 = vmatprep.mubr.msk.f32.mxu0 %vm3971_vm1, %v3970_v16 }
0x2aef   :  { %3528 = vmatprep.subr.mxu0 %v3970_v16 }
0x2af0   :  { %3529 = vmatpush3.msra.mxu0 %v2536_v58 }
0x2af1   :  { %3530 = vmatprep.subr.mxu0 %v3970_v16 }
0x2af2   :  { %3531 = vmatpush3.msra.mxu0 %v2535_v6 }
0x2af3   :  { %3532 = vmatprep.subr.mxu0 %v3970_v16 }
0x2af4   :  { %3533 = vmatpush3.msra.mxu0 %v2534_v59 }
0x2af5   :  { %3535 = vmatmul.mubr.msk.f32.vlgmr.msra.gmra.mxu0 %vm523_vm2, %v2458_v28  ;;  %2833 = vmatprep.subr.mxu0 %v2793_v2 }
0x2af6   :  { %2873 = vmatprep.mubr.f32.mxu0 %v3970_v16 }
0x2bad   :  { %v2530_v60 = vpop.f32.mrf.mxu0 }
0x2bae   :  { %3524 = vmatmul.mubr.msk.f32.vlgmr.msra.gmra.mxu1 %vm523_vm2, %v2530_v60 }
0x2baf   :  { %v3514_v36 = vpop.f32.mrf.mxu0  ;;  %3545 = vmatprep.mubr.msk.f32.mxu1 %vm3971_vm1, %v3970_v16  ;;  %3538 = vmatpush3.msra.mxu1 %v2703_v62 }
0x2bb0   :  { %3539 = vmatprep.subr.mxu1 %v3970_v16 }
0x2bb1   :  { %3540 = vmatpush3.msra.mxu1 %v2702_v48 }
0x2bb2   :  { %3541 = vmatprep.subr.mxu1 %v3970_v16 }
0x2bb3   :  { %3542 = vmatpush3.msra.mxu1 %v2701_v63 }
0x2bb4   :  { %3543 = vmatprep.subr.mxu1 %v3970_v16  ;;  %v2792_v16 = vld [vmem:[#allocation21 + $0x30] sm:$0xff] }
0x2bb5   :  { %v2683_v61 = vpop.f32.mrf.mxu0  ;;  %3544 = vmatpush3.msra.mxu1 %v2700_v1  ;;  %2834 = vmatpush1.msra.mxu0 %v2792_v16 }
0x2bb6   :  { %2835 = vmatprep.subr.mxu0 %v2791_v20 }
0x2bb7   :  { %v3536_v37 = vpop.f32.mrf.mxu0  ;;  %2836 = vmatpush1.msra.mxu0 %v2790_v21 }
0x2bb8   :  { %2837 = vmatprep.subr.mxu0 %v2789_v22 }
0x2bb9   :  { %2838 = vmatpush1.msra.mxu0 %v2788_v23 }
0x2bba   :  { %2839 = vmatprep.subr.mxu0 %v2787_v3 }
0x2bbb   :  { %2840 = vmatpush1.msra.mxu0 %v2786_v24 }
0x2c6e   :  { %v2611_v5 = vpop.f32.mrf.mxu1 }
0x2c6f   :  { %v2684_v4 = vadd.f32 %v2683_v61, %v2611_v5 }
0x2c70   :  { %v3525_v10 = vpop.f32.mrf.mxu1 }
0x2c71   :  { %v2694_v11 = vadd.f32 %v3117_v7, %v2684_v4 }
0x2c73   :  { %v2696_v12 = vmul.f32 0.70710677, %v2694_v11  ;;  %v2695_v17 = vmul.f32 0.5, %v2694_v11 }
0x2c75   :  { %3698 = verf.f32 %v2696_v12 }
0x2c82   :  { %v3699_v15 = vpop.eup %3698 }
0x2c83   :  { %v2698_v18 = vadd.f32 1.0, %v3699_v15 }
0x2c85   :  { %v2699_v19 = vmul.f32 %v2698_v18, %v2695_v17 }
0x2c87   :  { %3546 = vmatmul.mubr.msk.f32.vlgmr.msra.gmra.mxu1 %vm523_vm2, %v2699_v19 }
0x2d47   :  { %v2780_v26 = vpop.f32.mrf.mxu1 }
0x2d48   :  { %v2781_v29 = vadd.f32 %v3118_v13, %v2780_v26 }
0x2d49   :  { %v3547_v30 = vpop.f32.mrf.mxu1 }
0x2d4a   :  { %v2784_v31 = vmax.f32 %v2781_v29, 0.0 }
0x2d4c   :  { %v2785_v55 = vadd.f32 %v2784_v31, %v2699_v19 }
0x2d4e   :  { %3120 = vmatmul.mubr.msk.f32.vlgmr.msra.gmra.mxu0 %vm523_vm2, %v2785_v55 }
0x2e0e   :  { %v2875_v41 = vpop.f32.mrf.mxu0 }
0x2e0f   :  { %v4585_v42 = vadd.f32 %v2875_v41, %v2799_v39 }
0x2e10   :  { %v2877_v43 = vpop.f32.mrf.mxu0 }
0x2e11   :  { %2880 = vst [vmem:[%s4686_s18] sm:$0xff] %v4585_v42  ;;  %v4591_v9 = vadd.f32 %v2877_v43, %v2803_v40  ;;  %2883 = vrot.lane.b32.xlu0 %v4585_v42, %s3957_s2 }
0x2e13   :  { %2881 = vst [vmem:[%s4686_s18 + $0x8] sm:$0xff] %v4591_v9  ;;  %s3975_s18 = smov 120  }
0x2e83   :  { %v2884_v0 = vpop.permute.xlu0 %2883 }
0x2e84   :  { %vm2886_vm7 = vcmp.gt.f32.partialorder %v4585_v42, %v2884_v0 }
0x2e85   :  { %v2888_v45 = vsel %vm2886_vm7, 1, %v3974_v44  ;;  %v2887_v51 = vsel %vm2886_vm7, %v4585_v42, %v2884_v0 }
0x2e86   :  { %2895 = vrot.lane.b32.xlu0 %v2888_v45, %s3957_s2  ;;  %2890 = vrot.lane.b32.xlu1 %v2887_v51, %s3957_s2 }
0x2ef8   :  { %v2896_v49 = vpop.permute.xlu0 %2895  ;;  %v2891_v46 = vpop.permute.xlu1 %2890 }
0x2ef9   :  { %vm2893_vm8 = vcmp.gt.f32.partialorder %v4585_v42, %v2891_v46 }
0x2efa   :  { %v2897_v50 = vsel %vm2893_vm8, 2, %v2896_v49  ;;  %v2894_v52 = vsel %vm2893_vm8, %v4585_v42, %v2891_v46 }
0x2efb   :  { %2904 = vrot.lane.b32.xlu0 %v2897_v50, %s3957_s2  ;;  %2899 = vrot.lane.b32.xlu1 %v2894_v52, %s3957_s2 }
0x2f6d   :  { %v2905_v53 = vpop.permute.xlu0 %2904  ;;  %v2900_v54 = vpop.permute.xlu1 %2899 }
0x2f6e   :  { %vm2902_vm9 = vcmp.gt.f32.partialorder %v4585_v42, %v2900_v54 }
0x2f6f   :  { %v2906_v14 = vsel %vm2902_vm9, 3, %v2905_v53  ;;  %v2903_v25 = vsel %vm2902_vm9, %v4585_v42, %v2900_v54 }
0x2f70   :  { %2913 = vrot.lane.b32.xlu0 %v2906_v14, %s3957_s2  ;;  %2908 = vrot.lane.b32.xlu1 %v2903_v25, %s3957_s2 }
0x2fe2   :  { %v2914_v56 = vpop.permute.xlu0 %2913  ;;  %v2909_v8 = vpop.permute.xlu1 %2908 }
0x2fe3   :  { %vm2911_vm10 = vcmp.gt.f32.partialorder %v4585_v42, %v2909_v8 }
0x2fe4   :  { %v2915_v27 = vsel %vm2911_vm10, 4, %v2914_v56  ;;  %v2912_v34 = vsel %vm2911_vm10, %v4585_v42, %v2909_v8 }
0x2fe5   :  { %2922 = vrot.lane.b32.xlu0 %v2915_v27, %s3957_s2  ;;  %2917 = vrot.lane.b32.xlu1 %v2912_v34, %s3957_s2 }
0x3057   :  { %v2923_v28 = vpop.permute.xlu0 %2922  ;;  %v2918_v57 = vpop.permute.xlu1 %2917 }
0x3058   :  { %vm2920_vm11 = vcmp.gt.f32.partialorder %v4585_v42, %v2918_v57 }
0x3059   :  { %v2924_v58 = vsel %vm2920_vm11, 5, %v2923_v28  ;;  %v2921_v6 = vsel %vm2920_vm11, %v4585_v42, %v2918_v57 }
0x305a   :  { %2931 = vrot.lane.b32.xlu0 %v2924_v58, %s3957_s2  ;;  %2926 = vrot.lane.b32.xlu1 %v2921_v6, %s3957_s2 }
0x30cc   :  { %v2932_v59 = vpop.permute.xlu0 %2931  ;;  %v2927_v35 = vpop.permute.xlu1 %2926 }
0x30cd   :  { %vm2929_vm12 = vcmp.gt.f32.partialorder %v4585_v42, %v2927_v35 }
0x30ce   :  { %v2933_v60 = vsel %vm2929_vm12, 6, %v2932_v59  ;;  %v2930_v36 = vsel %vm2929_vm12, %v4585_v42, %v2927_v35 }
0x30cf   :  { %2940 = vrot.lane.b32.xlu0 %v2933_v60, %s3957_s2  ;;  %2935 = vrot.lane.b32.xlu1 %v2930_v36, %s3957_s2 }
0x3141   :  { %v2941_v61 = vpop.permute.xlu0 %2940  ;;  %v2936_v37 = vpop.permute.xlu1 %2935 }
0x3142   :  { %vm2938_vm13 = vcmp.gt.f32.partialorder %v4585_v42, %v2936_v37 }
0x3143   :  { %v2942_v62 = vsel %vm2938_vm13, 7, %v2941_v61  ;;  %v2939_v48 = vsel %vm2938_vm13, %v4585_v42, %v2936_v37 }
0x3144   :  { %2949 = vrot.lane.b32.xlu0 %v2942_v62, %s3957_s2  ;;  %2944 = vrot.lane.b32.xlu1 %v2939_v48, %s3957_s2 }
0x31b6   :  { %v2950_v63 = vpop.permute.xlu0 %2949  ;;  %v2945_v1 = vpop.permute.xlu1 %2944 }
0x31b7   :  { %vm2947_vm14 = vcmp.gt.f32.partialorder %v4585_v42, %v2945_v1 }
0x31b8   :  { %v2951_v2 = vsel %vm2947_vm14, 8, %v2950_v63  ;;  %v2948_v5 = vsel %vm2947_vm14, %v4585_v42, %v2945_v1 }
0x31b9   :  { %2958 = vrot.lane.b32.xlu0 %v2951_v2, %s3957_s2  ;;  %2953 = vrot.lane.b32.xlu1 %v2948_v5, %s3957_s2 }
0x322b   :  { %v2959_v7 = vpop.permute.xlu0 %2958  ;;  %v2954_v4 = vpop.permute.xlu1 %2953 }
0x322c   :  { %vm2956_vm15 = vcmp.gt.f32.partialorder %v4585_v42, %v2954_v4 }
0x322d   :  { %v2960_v10 = vsel %vm2956_vm15, 9, %v2959_v7  ;;  %v2957_v11 = vsel %vm2956_vm15, %v4585_v42, %v2954_v4 }
0x322e   :  { %2967 = vrot.lane.b32.xlu0 %v2960_v10, %s3957_s2  ;;  %2962 = vrot.lane.b32.xlu1 %v2957_v11, %s3957_s2 }
0x32a0   :  { %v2968_v12 = vpop.permute.xlu0 %2967  ;;  %v2963_v15 = vpop.permute.xlu1 %2962 }
0x32a1   :  { %vm2965_vm0 = vcmp.gt.f32.partialorder %v4585_v42, %v2963_v15 }
0x32a2   :  { %v2969_v17 = vsel %vm2965_vm0, 10, %v2968_v12  ;;  %v2966_v18 = vsel %vm2965_vm0, %v4585_v42, %v2963_v15 }
0x32a3   :  { %2976 = vrot.lane.b32.xlu0 %v2969_v17, %s3957_s2  ;;  %2971 = vrot.lane.b32.xlu1 %v2966_v18, %s3957_s2 }
0x3315   :  { %v2977_v19 = vpop.permute.xlu0 %2976  ;;  %v2972_v16 = vpop.permute.xlu1 %2971 }
0x3316   :  { %vm2974_vm1 = vcmp.gt.f32.partialorder %v4585_v42, %v2972_v16 }
0x3317   :  { %v2978_v20 = vsel %vm2974_vm1, 11, %v2977_v19  ;;  %v2975_v21 = vsel %vm2974_vm1, %v4585_v42, %v2972_v16 }
0x3318   :  { %2985 = vrot.lane.b32.xlu0 %v2978_v20, %s3957_s2  ;;  %2980 = vrot.lane.b32.xlu1 %v2975_v21, %s3957_s2 }
0x338a   :  { %v2986_v22 = vpop.permute.xlu0 %2985  ;;  %v2981_v23 = vpop.permute.xlu1 %2980 }
0x338b   :  { %vm2983_vm2 = vcmp.gt.f32.partialorder %v4585_v42, %v2981_v23 }
0x338c   :  { %v2987_v3 = vsel %vm2983_vm2, 12, %v2986_v22  ;;  %v2984_v24 = vsel %vm2983_vm2, %v4585_v42, %v2981_v23 }
0x338d   :  { %2994 = vrot.lane.b32.xlu0 %v2987_v3, %s3957_s2  ;;  %2989 = vrot.lane.b32.xlu1 %v2984_v24, %s3957_s2 }
0x33ff   :  { %v2995_v13 = vpop.permute.xlu0 %2994  ;;  %v2990_v26 = vpop.permute.xlu1 %2989 }
0x3400   :  { %vm2992_vm3 = vcmp.gt.f32.partialorder %v4585_v42, %v2990_v26 }
0x3401   :  { %v2996_v29 = vsel %vm2992_vm3, 13, %v2995_v13  ;;  %v2993_v30 = vsel %vm2992_vm3, %v4585_v42, %v2990_v26 }
0x3402   :  { %3003 = vrot.lane.b32.xlu0 %v2996_v29, %s3957_s2  ;;  %2998 = vrot.lane.b32.xlu1 %v2993_v30, %s3957_s2 }
0x3474   :  { %v3004_v31 = vpop.permute.xlu0 %3003  ;;  %v2999_v55 = vpop.permute.xlu1 %2998 }
0x3475   :  { %vm3001_vm4 = vcmp.gt.f32.partialorder %v4585_v42, %v2999_v55 }
0x3476   :  { %v3005_v47 = vsel %vm3001_vm4, 14, %v3004_v31  ;;  %v3002_v32 = vsel %vm3001_vm4, %v4585_v42, %v2999_v55 }
0x3477   :  { %3012 = vrot.lane.b32.xlu0 %v3005_v47, %s3957_s2  ;;  %3007 = vrot.lane.b32.xlu1 %v3002_v32, %s3957_s2 }
0x34e9   :  { %v3013_v33 = vpop.permute.xlu0 %3012  ;;  %v3008_v38 = vpop.permute.xlu1 %3007 }
0x34ea   :  { %vm3010_vm5 = vcmp.gt.f32.partialorder %v4585_v42, %v3008_v38 }
0x34eb   :  { %v3014_v39 = vsel %vm3010_vm5, 15, %v3013_v33  ;;  %v3011_v40 = vsel %vm3010_vm5, %v4585_v42, %v3008_v38 }
0x34ec   :  { %3021 = vrot.lane.b32.xlu0 %v3014_v39, %s3957_s2  ;;  %3016 = vrot.lane.b32.xlu1 %v3011_v40, %s3957_s2 }
0x355e   :  { %v3022_v41 = vpop.permute.xlu0 %3021  ;;  %v3017_v43 = vpop.permute.xlu1 %3016 }
0x355f   :  { %vm3019_vm7 = vcmp.gt.f32.partialorder %v4591_v9, %v3017_v43 }
0x3560   :  { %v3023_v0 = vsel %vm3019_vm7, 16, %v3022_v41  ;;  %v3020_v44 = vsel %vm3019_vm7, %v4591_v9, %v3017_v43 }
0x3561   :  { %3029 = vrot.lane.b32.xlu0 %v3023_v0, %s3957_s2  ;;  %3025 = vrot.lane.b32.xlu1 %v3020_v44, %s3957_s2 }
0x35d3   :  { %v3030_v45 = vpop.permute.xlu0 %3029  ;;  %v3026_v51 = vpop.permute.xlu1 %3025 }
0x35d4   :  { %vm3028_vm8 = vcmp.gt.f32.partialorder %v4591_v9, %v3026_v51 }
0x35d5   :  { %v3031_v42 = vsel %vm3028_vm8, 17, %v3030_v45 }
0x35d6   :  { %3032 = vrot.lane.b32.xlu1 %v3031_v42, %s3975_s18 }
0x3648   :  { %v3033_v49 = vpop.permute.xlu1 %3032 }
0x3649   :  { %3034 = vst.msk [vmem:[%s4687_s19] sm:$0xff] %vm2460_vm6, %v3033_v49 }
0x364a   :  { %3043 = vsyncpa [#allocation5], 1 }
0x364b   :  { %3044 = vsyncpa [#allocation7], 1 }
0x364c   :  { %3045 = vsyncpa [#allocation10], 1 }
0x364d   :  { %3046 = vsyncpa [#allocation13], 1 }
0x364e   :  { %3047 = vsyncpa [#allocation16], 1 }
0x364f   :  { %3048 = vsyncpa [#allocation19], 1 }
0x3650   :  { %3049 = vsyncpa [#allocation22], 1 }

</bundles_post_ra>
